<compile_context>
chip_gen: v7x
topology: tpu7x:2x2x1
jax: 0.10.0
libtpu: 0.0.40
codegen_flags: <defaults>
</compile_context>

<pallas_src>
import functools

import jax
import jax.numpy as jnp
from jax import lax
from jax.experimental import pallas as pl
from jax.experimental.pallas import tpu as pltpu


def _round_up(x, m):
    return ((int(x) + m - 1) // m) * m


def _cdiv(a, b):
    return -(-int(a) // int(b))


def _plan_tiles(extent, row_bytes, budget_bytes, max_cols=None):
    """Pick a lane tile (multiple of 128) covering `extent`.

    The tile is chosen so a single buffer is ~budget_bytes (byte-based sizing,
    per perf review), balanced so the last tile is not pathologically empty.
    Returns (tile, n_tiles, need_tail_mask).  The host never pads the point
    axis; the last tile may overrun the array and must be masked in-kernel.
    """
    extent = int(extent)
    if extent <= 128:
        return extent, 1, False
    budget_cols = max(128, (int(budget_bytes) // max(int(row_bytes), 1)) // 128 * 128)
    if max_cols is not None:
        budget_cols = min(budget_cols, max(128, (int(max_cols) // 128) * 128))
    floor_cols = (extent // 128) * 128          # never exceed the array dim
    n = _cdiv(extent, budget_cols)
    tile = min(_round_up(_cdiv(extent, n), 128), floor_cols)
    tile = max(tile, 128)
    n = _cdiv(extent, tile)
    return tile, n, (n * tile != extent)


def _mosaic_params(dims, buffers_bytes, extra_bytes=0):
    """CompilerParams with an explicit scoped-VMEM limit (32..64 MiB).

    Safe on v5e/v6e (128 MiB physical) and v7x (64 MiB per TensorCore) while
    comfortably above the per-buffer byte budgets used below.
    """
    need = int(buffers_bytes) + int(extra_bytes) + (16 << 20)
    vmem = min(64 << 20, max(32 << 20, need))
    return pltpu.CompilerParams(dimension_semantics=dims,
                                vmem_limit_bytes=vmem)


# ==========================================================================
# Kernel 1: per-(sample, layer) instance losses, streamed over the point axis
#   grid = (B, nP, L)   B: parallel, nP: point-reduction, L: layers (inner,
#   so the gt-mask tile stays resident in VMEM across all layers).
# ==========================================================================
def _instance_kernel(p_actual, need_colmask,
                     m_valid_ref,                       # SMEM prefetch (B,)
                     pred_cls_ref, gt_cls_ref, w_ref,   # (Q,K) (Q,1) (1,K)
                     pmask_ref, gmask_ref, pscore_ref,  # (M,TP) (M,TP) (M,1)
                     out_ref,                           # (L, 1, 4)
                     acc_pt, acc_p, acc_t, acc_in, acc_bin, acc_tb, acc_bce):
    b = pl.program_id(0)
    p = pl.program_id(1)
    l = pl.program_id(2)
    n_p = pl.num_programs(1)
    m_valid = m_valid_ref[b]
    m_rows = acc_pt.shape[1]

    # -------------------- init per-(b, l) accumulators ---------------------
    @pl.when(p == 0)
    def _init():
        z = jnp.zeros((m_rows, 1), jnp.float32)
        acc_pt[l] = z
        acc_p[l] = z
        acc_t[l] = z
        acc_in[l] = z
        acc_bin[l] = z
        acc_tb[l] = z
        acc_bce[l] = z

    # -------------------- streamed mask statistics for this tile -----------
    x = pmask_ref[...].astype(jnp.float32)               # (M, TP)
    t = gmask_ref[...].astype(jnp.float32)

    if need_colmask:  # ragged tail of the last tile (no host-side padding)
        tp = x.shape[-1]
        col = p * tp + lax.broadcasted_iota(jnp.int32, (1, tp), 1)
        cmask = col < p_actual
        x = jnp.where(cmask, x, -1.0e4)   # sigmoid/bce contributions -> 0
        t = jnp.where(cmask, t, 0.0)      # where (not *): kills NaN garbage

    e = jnp.exp(-jnp.abs(x))                  # single transcendental, reused
    bce = jnp.maximum(x, 0.0) - x * t + jnp.log1p(e)
    r = pl.reciprocal(1.0 + e, approx=True)   # EUP slot, nearly free
    p_sig = jnp.where(x >= 0.0, r, e * r)     # sigmoid(x) without a 2nd exp
    pos = x >= 0.0                            # == (sigmoid(x) >= 0.5) exactly
    tpos = t > 0.5
    binp = pos.astype(jnp.float32)
    tb = tpos.astype(jnp.float32)
    inter = jnp.logical_and(pos, tpos).astype(jnp.float32)

    acc_pt[l] += jnp.sum(p_sig * t, axis=-1, keepdims=True)
    acc_p[l] += jnp.sum(p_sig, axis=-1, keepdims=True)
    acc_t[l] += jnp.sum(t, axis=-1, keepdims=True)
    acc_in[l] += jnp.sum(inter, axis=-1, keepdims=True)
    acc_bin[l] += jnp.sum(binp, axis=-1, keepdims=True)
    acc_tb[l] += jnp.sum(tb, axis=-1, keepdims=True)
    acc_bce[l] += jnp.sum(bce, axis=-1, keepdims=True)

    # -------------------- finalize per-(sample, layer) scalars -------------
    @pl.when(p == n_p - 1)
    def _fin():
        # Weighted query-classification cross-entropy.
        logits = pred_cls_ref[...].astype(jnp.float32)    # (Q, K)
        q, k = logits.shape
        mx = jnp.max(logits, axis=-1, keepdims=True)
        lse = mx + jnp.log(jnp.sum(jnp.exp(logits - mx), axis=-1, keepdims=True))
        logp = logits - lse
        ids = lax.broadcasted_iota(jnp.int32, (q, k), 1)
        onehot = (gt_cls_ref[...] == ids).astype(jnp.float32)
        w = w_ref[...].astype(jnp.float32)                # (1, K)
        w_per = jnp.sum(onehot * w, axis=-1, keepdims=True)
        nll = -jnp.sum(onehot * logp, axis=-1, keepdims=True)
        denom = jnp.maximum(jnp.sum(w_per, keepdims=True), 1e-12)
        cls_val = jnp.sum(w_per * nll, keepdims=True) / denom

        rows = lax.broadcasted_iota(jnp.int32, (m_rows, 1), 0)
        rowmask = (rows < m_valid).astype(jnp.float32)    # padded rows -> 0
        m_f = m_valid.astype(jnp.float32)

        a_bce = acc_bce[l]
        a_pt = acc_pt[l]
        a_p = acc_p[l]
        a_t = acc_t[l]
        a_in = acc_in[l]
        a_bin = acc_bin[l]
        a_tb = acc_tb[l]

        bce_loss = (jnp.sum(a_bce * rowmask, keepdims=True)
                    / jnp.maximum(m_f * float(p_actual), 1.0))

        dice_rows = 1.0 - (2.0 * a_pt + 1.0) / (a_p + a_t + 1.0)
        dice_loss = (jnp.sum(dice_rows * rowmask, keepdims=True)
                     / jnp.maximum(m_f, 1.0))

        iou = a_in / (a_tb + a_bin - a_in + 1e-6)
        ps = pscore_ref[...].astype(jnp.float32)          # (M, 1)
        sel = (iou > 0.5).astype(jnp.float32) * rowmask
        cnt = jnp.sum(sel, keepdims=True)
        mse = jnp.sum(sel * (ps - iou) ** 2, keepdims=True) / jnp.maximum(cnt, 1.0)
        score_loss = jnp.where(cnt > 0.0, mse, 0.0)

        out_ref[l, :, 0:1] = cls_val
        out_ref[l, :, 1:2] = bce_loss
        out_ref[l, :, 2:3] = dice_loss
        out_ref[l, :, 3:4] = score_loss


def instance_losses_batched(pred_cls_all, gt_cls_all, class_weight_row,
                            pmask_all, gmask_all, pscore_all, m_valid,
                            *, buffer_bytes=4 << 20, max_tile=None):
    """Returns per-(sample, layer) [cls, bce, dice, score] of shape (B, L, 4)."""
    B, L, Q, K = pred_cls_all.shape
    _, M_pad, P = gmask_all.shape

    itemsize = max(jnp.dtype(pmask_all.dtype).itemsize,
                   jnp.dtype(gmask_all.dtype).itemsize)
    TP, nP, need_colmask = _plan_tiles(P, M_pad * itemsize, buffer_bytes, max_tile)

    kernel = functools.partial(_instance_kernel, int(P), need_colmask)
    grid_spec = pltpu.PrefetchScalarGridSpec(
        num_scalar_prefetch=1,
        grid=(B, nP, L),
        in_specs=[
            pl.BlockSpec((None, None, Q, K), lambda b, p, l, mv: (b, l, 0, 0)),
            pl.BlockSpec((None, Q, 1), lambda b, p, l, mv: (b, 0, 0)),
            pl.BlockSpec((1, K), lambda b, p, l, mv: (0, 0)),
            pl.BlockSpec((None, None, M_pad, TP), lambda b, p, l, mv: (b, l, 0, p)),
            # gt masks: the block index is constant across the (innermost)
            # layer axis, so this tile stays resident in VMEM and is streamed
            # from HBM once per (b, p) instead of once per layer.
            pl.BlockSpec((None, M_pad, TP), lambda b, p, l, mv: (b, 0, p)),
            pl.BlockSpec((None, None, M_pad, 1), lambda b, p, l, mv: (b, l, 0, 0)),
        ],
        out_specs=pl.BlockSpec((None, L, 1, 4), lambda b, p, l, mv: (b, 0, 0, 0)),
        scratch_shapes=[pltpu.VMEM((L, M_pad, 1), jnp.float32)] * 7,
    )

    tile_bytes = M_pad * TP * itemsize
    acc_bytes = 7 * L * _round_up(M_pad, 8) * 128 * 4
    out = pl.pallas_call(
        kernel,
        out_shape=jax.ShapeDtypeStruct((B, L, 1, 4), jnp.float32),
        grid_spec=grid_spec,
        compiler_params=_mosaic_params(
            # batch axis independent -> shard across v7x's 2 TensorCores;
            # point axis is the reduction; layer axis reuses accumulators.
            ("parallel", "arbitrary", "arbitrary"),
            4 * tile_bytes, acc_bytes),
    )(m_valid, pred_cls_all, gt_cls_all, class_weight_row,
      pmask_all, gmask_all, pscore_all)
    return out[:, :, 0, :]


# ==========================================================================
# Kernel 2: weighted semantic CE with ignore_index, lane-dense (K, N) layout
# ==========================================================================
def _seg_ce_kernel(ignore_index, n_actual, need_colmask,
                   logits_ref, labels_ref, w_ref, out_ref, num_ref, den_ref):
    t = pl.program_id(0)

    @pl.when(t == 0)
    def _():
        num_ref[...] = jnp.zeros_like(num_ref)
        den_ref[...] = jnp.zeros_like(den_ref)

    logits = logits_ref[...].astype(jnp.float32)          # (K, TN)
    labels = labels_ref[...]                              # (1, TN) int32
    valid = labels != ignore_index
    if need_colmask:
        tn = logits.shape[-1]
        col = t * tn + lax.broadcasted_iota(jnp.int32, (1, tn), 1)
        valid = jnp.logical_and(valid, col < n_actual)

    mx = jnp.max(logits, axis=0, keepdims=True)
    lse = mx + jnp.log(jnp.sum(jnp.exp(logits - mx), axis=0, keepdims=True))
    logp = logits - lse
    ids = lax.broadcasted_iota(jnp.int32, logits.shape, 0)
    sel = jnp.logical_and(ids == labels, valid)           # (K, TN) bool
    w = w_ref[...].astype(jnp.float32)                    # (K, 1)
    num_ref[...] += jnp.sum(jnp.where(sel, -logp, 0.0) * w, keepdims=True)
    den_ref[...] += jnp.sum(jnp.where(sel, w, 0.0), keepdims=True)

    @pl.when(t == pl.num_programs(0) - 1)
    def _():
        den = den_ref[...]
        # Guard: all points ignored -> 0 instead of NaN.
        out_ref[...] = jnp.where(den > 0.0,
                                 num_ref[...] / jnp.maximum(den, 1e-12), 0.0)


def seg_ce_loss(seg_logits, segment, class_weight_col, ignore_index,
                *, buffer_bytes=4 << 20, max_tile=None):
    N, K = seg_logits.shape
    logits_t = seg_logits.T                               # (K, N) lane-dense
    labels = segment.astype(jnp.int32).reshape(1, N)
    itemsize = jnp.dtype(seg_logits.dtype).itemsize
    TN, nT, need_colmask = _plan_tiles(N, K * itemsize, buffer_bytes, max_tile)
    out = pl.pallas_call(
        functools.partial(_seg_ce_kernel, int(ignore_index), int(N), need_colmask),
        out_shape=jax.ShapeDtypeStruct((1, 1), jnp.float32),
        grid=(nT,),
        in_specs=[pl.BlockSpec((K, TN), lambda t: (0, t)),
                  pl.BlockSpec((1, TN), lambda t: (0, t)),
                  pl.BlockSpec((K, 1), lambda t: (0, 0))],
        out_specs=pl.BlockSpec((1, 1), lambda t: (0, 0)),
        scratch_shapes=[pltpu.VMEM((1, 1), jnp.float32),
                        pltpu.VMEM((1, 1), jnp.float32)],
        compiler_params=_mosaic_params(("arbitrary",),
                                       2 * (K * TN * itemsize + TN * 4)),
    )(logits_t, labels, class_weight_col)
    return out[0, 0]


# ==========================================================================
# Kernel 3: masked L1 bias loss, lane-dense (3, N) layout
# ==========================================================================
def _bias_kernel(n_actual, need_colmask, pb_ref, gb_ref, m_ref, out_ref,
                 num_ref, den_ref):
    t = pl.program_id(0)

    @pl.when(t == 0)
    def _():
        num_ref[...] = jnp.zeros_like(num_ref)
        den_ref[...] = jnp.zeros_like(den_ref)

    pb = pb_ref[...].astype(jnp.float32)                  # (C, TN)
    gb = gb_ref[...].astype(jnp.float32)
    m = m_ref[...].astype(jnp.float32)                    # (1, TN)
    dist = jnp.sum(jnp.abs(pb - gb), axis=0, keepdims=True)
    prod = dist * m
    if need_colmask:
        tn = m.shape[-1]
        col = t * tn + lax.broadcasted_iota(jnp.int32, (1, tn), 1)
        cmask = col < n_actual
        prod = jnp.where(cmask, prod, 0.0)
        m = jnp.where(cmask, m, 0.0)
    num_ref[...] += jnp.sum(prod, keepdims=True)
    den_ref[...] += jnp.sum(m, keepdims=True)

    @pl.when(t == pl.num_programs(0) - 1)
    def _():
        out_ref[...] = num_ref[...] / (den_ref[...] + 1e-8)


def bias_loss(pred_bias, gt_bias, gt_mask, *, buffer_bytes=4 << 20,
              max_tile=None):
    N, C = pred_bias.shape
    pb = pred_bias.T                                      # (3, N)
    gb = gt_bias.T
    m = gt_mask.reshape(1, N)
    itemsize = jnp.dtype(pred_bias.dtype).itemsize
    TN, nT, need_colmask = _plan_tiles(N, C * itemsize, buffer_bytes, max_tile)
    out = pl.pallas_call(
        functools.partial(_bias_kernel, int(N), need_colmask),
        out_shape=jax.ShapeDtypeStruct((1, 1), jnp.float32),
        grid=(nT,),
        in_specs=[pl.BlockSpec((C, TN), lambda t: (0, t)),
                  pl.BlockSpec((C, TN), lambda t: (0, t)),
                  pl.BlockSpec((1, TN), lambda t: (0, t))],
        out_specs=pl.BlockSpec((1, 1), lambda t: (0, 0)),
        scratch_shapes=[pltpu.VMEM((1, 1), jnp.float32),
                        pltpu.VMEM((1, 1), jnp.float32)],
        compiler_params=_mosaic_params(("arbitrary",),
                                       4 * C * TN * itemsize + 2 * TN * 4),
    )(pb, gb, m)
    return out[0, 0]


# ==========================================================================
# SGIFormerLoss (JAX / Pallas)
# ==========================================================================
class SGIFormerLossPallas:
    def __init__(self, loss_weight, non_object_weight, num_classes,
                 fix_dice_loss_weight, iter_matcher, fix_mean_loss=False,
                 semantic_ignore_index=-1,
                 mask_buffer_bytes=4 << 20, io_buffer_bytes=4 << 20,
                 mask_tile=None, seg_tile=None, bias_tile=None):
        # TODO(synk): the Hungarian MATCHER registry has no clean Pallas
        # equivalent; matched (pred_idx, gt_idx) lists are supplied externally
        # (the iter_matcher=False path of the reference module).
        w = jnp.array([1.0] * num_classes + [float(non_object_weight)],
                      jnp.float32)
        self.class_weight_row = w.reshape(1, -1)   # (1, K) for the cls-CE
        self.class_weight_col = w.reshape(-1, 1)   # (K, 1) for the seg-CE
        self.loss_weight = loss_weight
        self.num_classes = num_classes
        self.fix_dice_loss_weight = fix_dice_loss_weight
        self.iter_matcher = iter_matcher
        self.fix_mean_loss = fix_mean_loss
        self.semantic_ignore_index = semantic_ignore_index
        self.mask_buffer_bytes = mask_buffer_bytes
        self.io_buffer_bytes = io_buffer_bytes
        self.mask_tile = mask_tile
        self.seg_tile = seg_tile
        self.bias_tile = bias_tile

    # --------------------------------------------------------------
    def forward(self, pred, target, matched_idx_list):
        gt_inst_info = target['inst_info']
        gt_point_info = target['point_info']

        # Main layer + all aux layers are processed by ONE kernel launch.
        layers = [dict(cls_list=pred['cls_list'], mask_list=pred['mask_list'],
                       score_list=pred['score_list'])]
        if 'aux_pred_list' in pred:
            layers.extend(pred['aux_pred_list'])
        L = len(layers)
        B = len(pred['mask_list'])
        Q, K = pred['cls_list'][0].shape
        P = pred['mask_list'][0].shape[1]
        num_classes = K - 1

        # ---- gt-side bookkeeping (done ONCE, shared across all layers) ----
        m_list, cls_flags, rows_cache = [], [], []
        n_mask_terms = 0
        for i in range(B):
            gt = gt_inst_info[i]
            if gt['cls'].shape[0] == 0:
                m_list.append(0)
                cls_flags.append(0.0)
                rows_cache.append(None)
                n_mask_terms += 1       # reference appends 0.0 to mask lists
                continue
            pred_idx, gt_idx = matched_idx_list[i]
            cls_flags.append(1.0)
            rows_cache.append((pred_idx, gt_idx))
            if gt['mask'].shape[0] == 0:
                m_list.append(0)
                continue
            m_list.append(int(pred_idx.shape[0]))
            n_mask_terms += 1

        M_pad = _round_up(max(max(m_list), 1), 8)

        gmask_dtype = None
        for i in range(B):
            if m_list[i] > 0:
                gmask_dtype = gt_inst_info[i]['mask'].dtype
                break
        if gmask_dtype is None:
            gmask_dtype = layers[0]['mask_list'][0].dtype

        gt_cls_rows, gmask_rows = [], []
        for i in range(B):
            gt = gt_inst_info[i]
            gt_cls_row = jnp.full((Q,), num_classes, dtype=jnp.int32)
            if cls_flags[i] > 0:
                pred_idx, gt_idx = rows_cache[i]
                gt_cls_row = gt_cls_row.at[pred_idx].set(
                    gt['cls'][gt_idx].astype(jnp.int32))
            gt_cls_rows.append(gt_cls_row)
            if m_list[i] > 0:
                pred_idx, gt_idx = rows_cache[i]
                gm = jnp.pad(gt['mask'][gt_idx],
                             ((0, M_pad - m_list[i]), (0, 0)))
            else:
                gm = jnp.zeros((M_pad, P), gmask_dtype)
            gmask_rows.append(gm)
        gt_cls_all = jnp.stack(gt_cls_rows)[..., None]        # (B, Q, 1)
        gmask_all = jnp.stack(gmask_rows)                     # (B, M_pad, P)
        m_valid = jnp.asarray(m_list, dtype=jnp.int32)
        cls_flags_arr = jnp.asarray(cls_flags, dtype=jnp.float32)

        # ---- pred-side per-layer prep (masks kept in their native dtype) --
        pred_cls_all = jnp.stack(
            [jnp.stack(layer['cls_list']) for layer in layers], axis=1)
        pm_layers, ps_layers, score_flags = [], [], []
        for layer in layers:
            ml, sl = layer['mask_list'], layer.get('score_list')
            score_flags.append(0.0 if sl is None else 1.0)
            pm_rows, ps_rows = [], []
            for i in range(B):
                m = m_list[i]
                if m > 0:
                    pred_idx, _ = rows_cache[i]
                    pm = jnp.pad(ml[i][pred_idx], ((0, M_pad - m), (0, 0)))
                    if sl is not None:
                        # NOTE: the reference pairs gt_score row j with
                        # pred_score[j] (filter_id is positional within the
                        # matched rows), NOT with pred_score[pred_idx[j]],
                        # so [:m] is the faithful gather.
                        ps = sl[i][:m, 0].astype(jnp.float32)
                    else:
                        ps = jnp.zeros((m,), jnp.float32)
                    ps = jnp.pad(ps, (0, M_pad - m))
                else:
                    pm = jnp.zeros((M_pad, P), ml[i].dtype)
                    ps = jnp.zeros((M_pad,), jnp.float32)
                pm_rows.append(pm)
                ps_rows.append(ps)
            pm_layers.append(jnp.stack(pm_rows))
            ps_layers.append(jnp.stack(ps_rows))
        pmask_all = jnp.stack(pm_layers, axis=1)              # (B, L, M_pad, P)
        pscore_all = jnp.stack(ps_layers, axis=1)[..., None]  # (B, L, M_pad, 1)

        out = instance_losses_batched(
            pred_cls_all, gt_cls_all, self.class_weight_row,
            pmask_all, gmask_all, pscore_all, m_valid,
            buffer_bytes=self.mask_buffer_bytes,
            max_tile=self.mask_tile)                          # (B, L, 4)

        cls_l = jnp.sum(out[:, :, 0] * cls_flags_arr[:, None], axis=0) / B
        bce_l = jnp.sum(out[:, :, 1], axis=0) / B
        dice_l = jnp.sum(out[:, :, 2], axis=0)
        score_l = (jnp.sum(out[:, :, 3], axis=0) / B
                   * jnp.asarray(score_flags, dtype=jnp.float32))

        if n_mask_terms > 0:
            if self.fix_dice_loss_weight:
                dice_l = dice_l / B * 4
            if self.fix_mean_loss:
                bce_l = bce_l * B / n_mask_terms
                dice_l = dice_l * B / n_mask_terms
        else:
            bce_l = jnp.zeros_like(bce_l)
            dice_l = jnp.zeros_like(dice_l)

        lw = self.loss_weight
        per_layer = (lw[0] * cls_l + lw[1] * bce_l + lw[2] * dice_l
                     + lw[3] * score_l)
        loss = jnp.sum(per_layer)

        loss_dict = dict(loss_cls=cls_l[0], loss_mask=bce_l[0],
                         loss_dice=dice_l[0], loss_score=score_l[0])

        if 'seg_logits' in pred:
            if pred['seg_logits'] is not None:
                seg_val = seg_ce_loss(pred['seg_logits'],
                                      gt_point_info['segment'],
                                      self.class_weight_col,
                                      self.semantic_ignore_index,
                                      buffer_bytes=self.io_buffer_bytes,
                                      max_tile=self.seg_tile)
                loss_seg = jnp.where(jnp.max(gt_point_info['segment']) >= 0,
                                     seg_val, 0.0)
                loss = loss + lw[4] * loss_seg
            else:
                loss_seg = jnp.float32(0.0)
            loss_dict['loss_seg'] = loss_seg

        if 'bias' in pred:
            if pred['bias'] is not None:
                lb = bias_loss(pred['bias'], gt_point_info['bias'],
                               gt_point_info['mask'],
                               buffer_bytes=self.io_buffer_bytes,
                               max_tile=self.bias_tile)
                loss = loss + lw[5] * lb
            else:
                lb = jnp.float32(0.0)
            loss_dict['loss_bias'] = lb

        loss_dict['loss'] = loss
        return loss_dict

    __call__ = forward


# ==========================================================================
if __name__ == "__main__":
    key = jax.random.PRNGKey(0)
    B, Q, num_classes = 2, 8, 4
    K = num_classes + 1
    P = 320            # mask points (not a multiple of 128 -> tail masking)
    N = 320            # semantic points
    G = [4, 3]         # gt instances per sample (ragged -> row masking)

    keys = list(jax.random.split(key, 32))
    ki = iter(range(32))
    nk = lambda: keys[next(ki)]

    cls_list = [jax.random.normal(nk(), (Q, K), jnp.float32) for _ in range(B)]
    mask_list = [jax.random.normal(nk(), (Q, P), jnp.float32) * 2.0 for _ in range(B)]
    score_list = [jax.random.uniform(nk(), (Q, 1), jnp.float32) for _ in range(B)]
    aux_cls = [jax.random.normal(nk(), (Q, K), jnp.float32) for _ in range(B)]
    aux_mask = [jax.random.normal(nk(), (Q, P), jnp.float32) * 2.0 for _ in range(B)]
    aux_score = [jax.random.uniform(nk(), (Q, 1), jnp.float32) for _ in range(B)]

    inst_info = []
    for b in range(B):
        g = G[b]
        gt_cls = jax.random.randint(nk(), (g,), 0, num_classes, jnp.int32)
        gt_mask = (jax.random.uniform(nk(), (g, P)) > 0.5).astype(jnp.float32)
        inst_info.append(dict(cls=gt_cls, mask=gt_mask))

    seg_logits = jax.random.normal(nk(), (N, K), jnp.float32)
    segment = jax.random.randint(nk(), (N,), 0, K, jnp.int32)
    segment = segment.at[:8].set(-1)                 # exercise ignore_index
    pred_bias = jax.random.normal(nk(), (N, 3), jnp.float32)
    gt_bias = jax.random.normal(nk(), (N, 3), jnp.float32)
    point_mask = (jax.random.uniform(nk(), (N,)) > 0.3).astype(jnp.float32)

    pred = dict(
        cls_list=cls_list, mask_list=mask_list, score_list=score_list,
        aux_pred_list=[dict(cls_list=aux_cls, mask_list=aux_mask,
                            score_list=aux_score)],
        seg_logits=seg_logits, bias=pred_bias,
    )
    target = dict(
        inst_info=inst_info,
        point_info=dict(segment=segment, bias=gt_bias, mask=point_mask),
    )
    # Deterministic identity matching (Hungarian matcher not implemented).
    matched_idx_list = [(jnp.arange(G[b]), jnp.arange(G[b])) for b in range(B)]

    loss_mod = SGIFormerLossPallas(
        loss_weight=[0.5, 1.0, 1.0, 0.5, 0.2, 1.0],
        non_object_weight=0.1,
        num_classes=num_classes,
        fix_dice_loss_weight=True,
        iter_matcher=False,
        fix_mean_loss=False,
        semantic_ignore_index=-1,
        # Small tile overrides so the demo exercises multi-step grid
        # accumulation and the in-kernel tail masks; production runs leave
        # these at None (byte-budgeted ~4 MiB buffers).
        mask_tile=128, seg_tile=128, bias_tile=128,
    )

    loss_dict = loss_mod(pred, target, matched_idx_list)
    jax.block_until_ready(loss_dict['loss'])
    assert jnp.isfinite(loss_dict['loss'])
    print("KERNEL_OK")
</pallas_src>

<mosaic_0001>
module attributes {stable_mosaic.version = 11 : i64} {
  func.func @_instance_kernel(%arg0: i32, %arg1: i32, %arg2: i32, %arg3: memref<2xi32, #tpu.memory_space<smem>>, %arg4: memref<1x1x8x5xf32, #tpu.memory_space<vmem>>, %arg5: memref<1x8x1xi32, #tpu.memory_space<vmem>>, %arg6: memref<1x5xf32, #tpu.memory_space<vmem>>, %arg7: memref<1x1x8x128xf32, #tpu.memory_space<vmem>>, %arg8: memref<1x8x128xf32, #tpu.memory_space<vmem>>, %arg9: memref<1x1x8x1xf32, #tpu.memory_space<vmem>>, %arg10: memref<1x2x1x4xf32, #tpu.memory_space<vmem>>, %arg11: memref<2x8x1xf32, #tpu.memory_space<vmem>>, %arg12: memref<2x8x1xf32, #tpu.memory_space<vmem>>, %arg13: memref<2x8x1xf32, #tpu.memory_space<vmem>>, %arg14: memref<2x8x1xf32, #tpu.memory_space<vmem>>, %arg15: memref<2x8x1xf32, #tpu.memory_space<vmem>>, %arg16: memref<2x8x1xf32, #tpu.memory_space<vmem>>, %arg17: memref<2x8x1xf32, #tpu.memory_space<vmem>>) attributes {dimension_semantics = [#tpu.dimension_semantics<parallel>, #tpu.dimension_semantics<arbitrary>, #tpu.dimension_semantics<arbitrary>], iteration_bounds = array<i64: 2, 3, 2>, scalar_prefetch = 1 : i64, scratch_operands = 7 : i64, tpu.core_type = #tpu.core_type<tc>, window_params = [{transform_indices = @transform_0, window_bounds = array<i64: 1, 1, 8, 5>}, {transform_indices = @transform_1, window_bounds = array<i64: 1, 8, 1>}, {pipeline_mode = #tpu.pipeline_mode<synchronous>, transform_indices = @transform_2, window_bounds = array<i64: 1, 5>}, {transform_indices = @transform_3, window_bounds = array<i64: 1, 1, 8, 128>}, {transform_indices = @transform_4, window_bounds = array<i64: 1, 8, 128>}, {transform_indices = @transform_5, window_bounds = array<i64: 1, 1, 8, 1>}, {transform_indices = @transform_6, window_bounds = array<i64: 1, 2, 1, 4>}]} {
    %0 = arith.index_cast %arg0 : i32 to index
    %1 = memref.load %arg3[%0] : memref<2xi32, #tpu.memory_space<smem>>
    %c0_i32 = arith.constant 0 : i32
    %2 = arith.cmpi eq, %arg1, %c0_i32 : i32
    %3 = arith.extui %2 : i1 to i32
    %c0_i32_0 = arith.constant 0 : i32
    %4 = arith.cmpi ne, %3, %c0_i32_0 : i32
    scf.if %4 {
      %cst_50 = arith.constant 0.000000e+00 : f32
      %125 = vector.broadcast %cst_50 : f32 to vector<8x1xf32>
      %126 = arith.index_cast %arg2 : i32 to index
      %c0_51 = arith.constant 0 : index
      %c0_52 = arith.constant 0 : index
      %127 = vector.load %arg11[%126, %c0_51, %c0_52] : memref<2x8x1xf32, #tpu.memory_space<vmem>>, vector<1x8x1xf32>
      %128 = vector.shape_cast %127 : vector<1x8x1xf32> to vector<8x1xf32>
      %129 = vector.shape_cast %125 : vector<8x1xf32> to vector<1x8x1xf32>
      tpu.vector_store %arg11[%126, %c0_51, %c0_52], %129 {strides = array<i32>} : memref<2x8x1xf32, #tpu.memory_space<vmem>>, vector<1x8x1xf32>,
      %130 = arith.index_cast %arg2 : i32 to index
      %c0_53 = arith.constant 0 : index
      %c0_54 = arith.constant 0 : index
      %131 = vector.load %arg12[%130, %c0_53, %c0_54] : memref<2x8x1xf32, #tpu.memory_space<vmem>>, vector<1x8x1xf32>
      %132 = vector.shape_cast %131 : vector<1x8x1xf32> to vector<8x1xf32>
      %133 = vector.shape_cast %125 : vector<8x1xf32> to vector<1x8x1xf32>
      tpu.vector_store %arg12[%130, %c0_53, %c0_54], %133 {strides = array<i32>} : memref<2x8x1xf32, #tpu.memory_space<vmem>>, vector<1x8x1xf32>,
      %134 = arith.index_cast %arg2 : i32 to index
      %c0_55 = arith.constant 0 : index
      %c0_56 = arith.constant 0 : index
      %135 = vector.load %arg13[%134, %c0_55, %c0_56] : memref<2x8x1xf32, #tpu.memory_space<vmem>>, vector<1x8x1xf32>
      %136 = vector.shape_cast %135 : vector<1x8x1xf32> to vector<8x1xf32>
      %137 = vector.shape_cast %125 : vector<8x1xf32> to vector<1x8x1xf32>
      tpu.vector_store %arg13[%134, %c0_55, %c0_56], %137 {strides = array<i32>} : memref<2x8x1xf32, #tpu.memory_space<vmem>>, vector<1x8x1xf32>,
      %138 = arith.index_cast %arg2 : i32 to index
      %c0_57 = arith.constant 0 : index
      %c0_58 = arith.constant 0 : index
      %139 = vector.load %arg14[%138, %c0_57, %c0_58] : memref<2x8x1xf32, #tpu.memory_space<vmem>>, vector<1x8x1xf32>
      %140 = vector.shape_cast %139 : vector<1x8x1xf32> to vector<8x1xf32>
      %141 = vector.shape_cast %125 : vector<8x1xf32> to vector<1x8x1xf32>
      tpu.vector_store %arg14[%138, %c0_57, %c0_58], %141 {strides = array<i32>} : memref<2x8x1xf32, #tpu.memory_space<vmem>>, vector<1x8x1xf32>,
      %142 = arith.index_cast %arg2 : i32 to index
      %c0_59 = arith.constant 0 : index
      %c0_60 = arith.constant 0 : index
      %143 = vector.load %arg15[%142, %c0_59, %c0_60] : memref<2x8x1xf32, #tpu.memory_space<vmem>>, vector<1x8x1xf32>
      %144 = vector.shape_cast %143 : vector<1x8x1xf32> to vector<8x1xf32>
      %145 = vector.shape_cast %125 : vector<8x1xf32> to vector<1x8x1xf32>
      tpu.vector_store %arg15[%142, %c0_59, %c0_60], %145 {strides = array<i32>} : memref<2x8x1xf32, #tpu.memory_space<vmem>>, vector<1x8x1xf32>,
      %146 = arith.index_cast %arg2 : i32 to index
      %c0_61 = arith.constant 0 : index
      %c0_62 = arith.constant 0 : index
      %147 = vector.load %arg16[%146, %c0_61, %c0_62] : memref<2x8x1xf32, #tpu.memory_space<vmem>>, vector<1x8x1xf32>
      %148 = vector.shape_cast %147 : vector<1x8x1xf32> to vector<8x1xf32>
      %149 = vector.shape_cast %125 : vector<8x1xf32> to vector<1x8x1xf32>
      tpu.vector_store %arg16[%146, %c0_61, %c0_62], %149 {strides = array<i32>} : memref<2x8x1xf32, #tpu.memory_space<vmem>>, vector<1x8x1xf32>,
      %150 = arith.index_cast %arg2 : i32 to index
      %c0_63 = arith.constant 0 : index
      %c0_64 = arith.constant 0 : index
      %151 = vector.load %arg17[%150, %c0_63, %c0_64] : memref<2x8x1xf32, #tpu.memory_space<vmem>>, vector<1x8x1xf32>
      %152 = vector.shape_cast %151 : vector<1x8x1xf32> to vector<8x1xf32>
      %153 = vector.shape_cast %125 : vector<8x1xf32> to vector<1x8x1xf32>
      tpu.vector_store %arg17[%150, %c0_63, %c0_64], %153 {strides = array<i32>} : memref<2x8x1xf32, #tpu.memory_space<vmem>>, vector<1x8x1xf32>,
    } else {
    }
    %c0 = arith.constant 0 : index
    %c0_1 = arith.constant 0 : index
    %c0_2 = arith.constant 0 : index
    %c0_3 = arith.constant 0 : index
    %5 = vector.load %arg7[%c0, %c0_1, %c0_2, %c0_3] : memref<1x1x8x128xf32, #tpu.memory_space<vmem>>, vector<1x1x8x128xf32>
    %6 = vector.shape_cast %5 : vector<1x1x8x128xf32> to vector<8x128xf32>
    %c0_4 = arith.constant 0 : index
    %c0_5 = arith.constant 0 : index
    %c0_6 = arith.constant 0 : index
    %7 = vector.load %arg8[%c0_4, %c0_5, %c0_6] : memref<1x8x128xf32, #tpu.memory_space<vmem>>, vector<1x8x128xf32>
    %8 = vector.shape_cast %7 : vector<1x8x128xf32> to vector<8x128xf32>
    %c128_i32 = arith.constant 128 : i32
    %9 = arith.muli %arg1, %c128_i32 : i32
    %10 = tpu.iota {dimensions = array<i32: 1>} : vector<1x128xi32>
    %11 = vector.broadcast %9 : i32 to vector<1x128xi32>
    %12 = arith.addi %11, %10 : vector<1x128xi32>
    %c320_i32 = arith.constant 320 : i32
    %13 = vector.broadcast %c320_i32 : i32 to vector<1x128xi32>
    %14 = arith.cmpi slt, %12, %13 : vector<1x128xi32>
    %cst = arith.constant -1.000000e+04 : f32
    %15 = vector.shape_cast %14 : vector<1x128xi1> to vector<1x128xi1>
    %16 = vector.broadcast %15 : vector<1x128xi1> to vector<8x128xi1>
    %17 = vector.broadcast %cst : f32 to vector<8x128xf32>
    %18 = arith.select %16, %6, %17 : vector<8x128xi1>, vector<8x128xf32>
    %cst_7 = arith.constant 0.000000e+00 : f32
    %19 = vector.shape_cast %14 : vector<1x128xi1> to vector<1x128xi1>
    %20 = vector.broadcast %19 : vector<1x128xi1> to vector<8x128xi1>
    %21 = vector.broadcast %cst_7 : f32 to vector<8x128xf32>
    %22 = arith.select %20, %8, %21 : vector<8x128xi1>, vector<8x128xf32>
    %23 = math.absf %18 : vector<8x128xf32>
    %cst_8 = arith.constant 0.000000e+00 : f32
    %24 = vector.broadcast %cst_8 : f32 to vector<8x128xf32>
    %25 = arith.subf %24, %23 : vector<8x128xf32>
    %26 = math.exp %25 : vector<8x128xf32>
    %cst_9 = arith.constant 0.000000e+00 : f32
    %27 = vector.broadcast %cst_9 : f32 to vector<8x128xf32>
    %28 = arith.maximumf %18, %27 : vector<8x128xf32>
    %29 = arith.mulf %18, %22 : vector<8x128xf32>
    %30 = arith.subf %28, %29 : vector<8x128xf32>
    %31 = math.log1p %26 : vector<8x128xf32>
    %32 = arith.addf %30, %31 : vector<8x128xf32>
    %cst_10 = arith.constant 1.000000e+00 : f32
    %33 = vector.broadcast %cst_10 : f32 to vector<8x128xf32>
    %34 = arith.addf %33, %26 : vector<8x128xf32>
    %35 = tpu.reciprocal %34 {approx = true} : vector<8x128xf32> -> vector<8x128xf32>
    %cst_11 = arith.constant 0.000000e+00 : f32
    %36 = vector.broadcast %cst_11 : f32 to vector<8x128xf32>
    %37 = arith.cmpf oge, %18, %36 : vector<8x128xf32>
    %38 = arith.mulf %26, %35 : vector<8x128xf32>
    %39 = arith.select %37, %35, %38 : vector<8x128xi1>, vector<8x128xf32>
    %cst_12 = arith.constant 0.000000e+00 : f32
    %40 = vector.broadcast %cst_12 : f32 to vector<8x128xf32>
    %41 = arith.cmpf oge, %18, %40 : vector<8x128xf32>
    %cst_13 = arith.constant 5.000000e-01 : f32
    %42 = vector.broadcast %cst_13 : f32 to vector<8x128xf32>
    %43 = arith.cmpf ogt, %22, %42 : vector<8x128xf32>
    %44 = arith.extui %41 : vector<8x128xi1> to vector<8x128xi32>
    %45 = arith.sitofp %44 : vector<8x128xi32> to vector<8x128xf32>
    %46 = arith.extui %43 : vector<8x128xi1> to vector<8x128xi32>
    %47 = arith.sitofp %46 : vector<8x128xi32> to vector<8x128xf32>
    %48 = arith.andi %41, %43 : vector<8x128xi1>
    %49 = arith.extui %48 : vector<8x128xi1> to vector<8x128xi32>
    %50 = arith.sitofp %49 : vector<8x128xi32> to vector<8x128xf32>
    %51 = arith.index_cast %arg2 : i32 to index
    %c0_14 = arith.constant 0 : index
    %c0_15 = arith.constant 0 : index
    %52 = vector.load %arg11[%51, %c0_14, %c0_15] : memref<2x8x1xf32, #tpu.memory_space<vmem>>, vector<1x8x1xf32>
    %53 = vector.shape_cast %52 : vector<1x8x1xf32> to vector<8x1xf32>
    %54 = arith.mulf %39, %22 : vector<8x128xf32>
    %cst_16 = arith.constant dense<0.000000e+00> : vector<8xf32>
    %55 = vector.multi_reduction <add>, %54, %cst_16 [1] : vector<8x128xf32> to vector<8xf32>
    %56 = vector.shape_cast %55 : vector<8xf32> to vector<8x1xf32>
    %57 = arith.addf %53, %56 : vector<8x1xf32>
    %58 = arith.index_cast %arg2 : i32 to index
    %c0_17 = arith.constant 0 : index
    %c0_18 = arith.constant 0 : index
    %59 = vector.load %arg11[%58, %c0_17, %c0_18] : memref<2x8x1xf32, #tpu.memory_space<vmem>>, vector<1x8x1xf32>
    %60 = vector.shape_cast %59 : vector<1x8x1xf32> to vector<8x1xf32>
    %61 = vector.shape_cast %57 : vector<8x1xf32> to vector<1x8x1xf32>
    tpu.vector_store %arg11[%58, %c0_17, %c0_18], %61 {strides = array<i32>} : memref<2x8x1xf32, #tpu.memory_space<vmem>>, vector<1x8x1xf32>,
    %62 = arith.index_cast %arg2 : i32 to index
    %c0_19 = arith.constant 0 : index
    %c0_20 = arith.constant 0 : index
    %63 = vector.load %arg12[%62, %c0_19, %c0_20] : memref<2x8x1xf32, #tpu.memory_space<vmem>>, vector<1x8x1xf32>
    %64 = vector.shape_cast %63 : vector<1x8x1xf32> to vector<8x1xf32>
    %cst_21 = arith.constant dense<0.000000e+00> : vector<8xf32>
    %65 = vector.multi_reduction <add>, %39, %cst_21 [1] : vector<8x128xf32> to vector<8xf32>
    %66 = vector.shape_cast %65 : vector<8xf32> to vector<8x1xf32>
    %67 = arith.addf %64, %66 : vector<8x1xf32>
    %68 = arith.index_cast %arg2 : i32 to index
    %c0_22 = arith.constant 0 : index
    %c0_23 = arith.constant 0 : index
    %69 = vector.load %arg12[%68, %c0_22, %c0_23] : memref<2x8x1xf32, #tpu.memory_space<vmem>>, vector<1x8x1xf32>
    %70 = vector.shape_cast %69 : vector<1x8x1xf32> to vector<8x1xf32>
    %71 = vector.shape_cast %67 : vector<8x1xf32> to vector<1x8x1xf32>
    tpu.vector_store %arg12[%68, %c0_22, %c0_23], %71 {strides = array<i32>} : memref<2x8x1xf32, #tpu.memory_space<vmem>>, vector<1x8x1xf32>,
    %72 = arith.index_cast %arg2 : i32 to index
    %c0_24 = arith.constant 0 : index
    %c0_25 = arith.constant 0 : index
    %73 = vector.load %arg13[%72, %c0_24, %c0_25] : memref<2x8x1xf32, #tpu.memory_space<vmem>>, vector<1x8x1xf32>
    %74 = vector.shape_cast %73 : vector<1x8x1xf32> to vector<8x1xf32>
    %cst_26 = arith.constant dense<0.000000e+00> : vector<8xf32>
    %75 = vector.multi_reduction <add>, %22, %cst_26 [1] : vector<8x128xf32> to vector<8xf32>
    %76 = vector.shape_cast %75 : vector<8xf32> to vector<8x1xf32>
    %77 = arith.addf %74, %76 : vector<8x1xf32>
    %78 = arith.index_cast %arg2 : i32 to index
    %c0_27 = arith.constant 0 : index
    %c0_28 = arith.constant 0 : index
    %79 = vector.load %arg13[%78, %c0_27, %c0_28] : memref<2x8x1xf32, #tpu.memory_space<vmem>>, vector<1x8x1xf32>
    %80 = vector.shape_cast %79 : vector<1x8x1xf32> to vector<8x1xf32>
    %81 = vector.shape_cast %77 : vector<8x1xf32> to vector<1x8x1xf32>
    tpu.vector_store %arg13[%78, %c0_27, %c0_28], %81 {strides = array<i32>} : memref<2x8x1xf32, #tpu.memory_space<vmem>>, vector<1x8x1xf32>,
    %82 = arith.index_cast %arg2 : i32 to index
    %c0_29 = arith.constant 0 : index
    %c0_30 = arith.constant 0 : index
    %83 = vector.load %arg14[%82, %c0_29, %c0_30] : memref<2x8x1xf32, #tpu.memory_space<vmem>>, vector<1x8x1xf32>
    %84 = vector.shape_cast %83 : vector<1x8x1xf32> to vector<8x1xf32>
    %cst_31 = arith.constant dense<0.000000e+00> : vector<8xf32>
    %85 = vector.multi_reduction <add>, %50, %cst_31 [1] : vector<8x128xf32> to vector<8xf32>
    %86 = vector.shape_cast %85 : vector<8xf32> to vector<8x1xf32>
    %87 = arith.addf %84, %86 : vector<8x1xf32>
    %88 = arith.index_cast %arg2 : i32 to index
    %c0_32 = arith.constant 0 : index
    %c0_33 = arith.constant 0 : index
    %89 = vector.load %arg14[%88, %c0_32, %c0_33] : memref<2x8x1xf32, #tpu.memory_space<vmem>>, vector<1x8x1xf32>
    %90 = vector.shape_cast %89 : vector<1x8x1xf32> to vector<8x1xf32>
    %91 = vector.shape_cast %87 : vector<8x1xf32> to vector<1x8x1xf32>
    tpu.vector_store %arg14[%88, %c0_32, %c0_33], %91 {strides = array<i32>} : memref<2x8x1xf32, #tpu.memory_space<vmem>>, vector<1x8x1xf32>,
    %92 = arith.index_cast %arg2 : i32 to index
    %c0_34 = arith.constant 0 : index
    %c0_35 = arith.constant 0 : index
    %93 = vector.load %arg15[%92, %c0_34, %c0_35] : memref<2x8x1xf32, #tpu.memory_space<vmem>>, vector<1x8x1xf32>
    %94 = vector.shape_cast %93 : vector<1x8x1xf32> to vector<8x1xf32>
    %cst_36 = arith.constant dense<0.000000e+00> : vector<8xf32>
    %95 = vector.multi_reduction <add>, %45, %cst_36 [1] : vector<8x128xf32> to vector<8xf32>
    %96 = vector.shape_cast %95 : vector<8xf32> to vector<8x1xf32>
    %97 = arith.addf %94, %96 : vector<8x1xf32>
    %98 = arith.index_cast %arg2 : i32 to index
    %c0_37 = arith.constant 0 : index
    %c0_38 = arith.constant 0 : index
    %99 = vector.load %arg15[%98, %c0_37, %c0_38] : memref<2x8x1xf32, #tpu.memory_space<vmem>>, vector<1x8x1xf32>
    %100 = vector.shape_cast %99 : vector<1x8x1xf32> to vector<8x1xf32>
    %101 = vector.shape_cast %97 : vector<8x1xf32> to vector<1x8x1xf32>
    tpu.vector_store %arg15[%98, %c0_37, %c0_38], %101 {strides = array<i32>} : memref<2x8x1xf32, #tpu.memory_space<vmem>>, vector<1x8x1xf32>,
    %102 = arith.index_cast %arg2 : i32 to index
    %c0_39 = arith.constant 0 : index
    %c0_40 = arith.constant 0 : index
    %103 = vector.load %arg16[%102, %c0_39, %c0_40] : memref<2x8x1xf32, #tpu.memory_space<vmem>>, vector<1x8x1xf32>
    %104 = vector.shape_cast %103 : vector<1x8x1xf32> to vector<8x1xf32>
    %cst_41 = arith.constant dense<0.000000e+00> : vector<8xf32>
    %105 = vector.multi_reduction <add>, %47, %cst_41 [1] : vector<8x128xf32> to vector<8xf32>
    %106 = vector.shape_cast %105 : vector<8xf32> to vector<8x1xf32>
    %107 = arith.addf %104, %106 : vector<8x1xf32>
    %108 = arith.index_cast %arg2 : i32 to index
    %c0_42 = arith.constant 0 : index
    %c0_43 = arith.constant 0 : index
    %109 = vector.load %arg16[%108, %c0_42, %c0_43] : memref<2x8x1xf32, #tpu.memory_space<vmem>>, vector<1x8x1xf32>
    %110 = vector.shape_cast %109 : vector<1x8x1xf32> to vector<8x1xf32>
    %111 = vector.shape_cast %107 : vector<8x1xf32> to vector<1x8x1xf32>
    tpu.vector_store %arg16[%108, %c0_42, %c0_43], %111 {strides = array<i32>} : memref<2x8x1xf32, #tpu.memory_space<vmem>>, vector<1x8x1xf32>,
    %112 = arith.index_cast %arg2 : i32 to index
    %c0_44 = arith.constant 0 : index
    %c0_45 = arith.constant 0 : index
    %113 = vector.load %arg17[%112, %c0_44, %c0_45] : memref<2x8x1xf32, #tpu.memory_space<vmem>>, vector<1x8x1xf32>
    %114 = vector.shape_cast %113 : vector<1x8x1xf32> to vector<8x1xf32>
    %cst_46 = arith.constant dense<0.000000e+00> : vector<8xf32>
    %115 = vector.multi_reduction <add>, %32, %cst_46 [1] : vector<8x128xf32> to vector<8xf32>
    %116 = vector.shape_cast %115 : vector<8xf32> to vector<8x1xf32>
    %117 = arith.addf %114, %116 : vector<8x1xf32>
    %118 = arith.index_cast %arg2 : i32 to index
    %c0_47 = arith.constant 0 : index
    %c0_48 = arith.constant 0 : index
    %119 = vector.load %arg17[%118, %c0_47, %c0_48] : memref<2x8x1xf32, #tpu.memory_space<vmem>>, vector<1x8x1xf32>
    %120 = vector.shape_cast %119 : vector<1x8x1xf32> to vector<8x1xf32>
    %121 = vector.shape_cast %117 : vector<8x1xf32> to vector<1x8x1xf32>
    tpu.vector_store %arg17[%118, %c0_47, %c0_48], %121 {strides = array<i32>} : memref<2x8x1xf32, #tpu.memory_space<vmem>>, vector<1x8x1xf32>,
    %c2_i32 = arith.constant 2 : i32
    %122 = arith.cmpi eq, %arg1, %c2_i32 : i32
    %123 = arith.extui %122 : i1 to i32
    %c0_i32_49 = arith.constant 0 : i32
    %124 = arith.cmpi ne, %123, %c0_i32_49 : i32
    scf.if %124 {
      %c0_50 = arith.constant 0 : index
      %c0_51 = arith.constant 0 : index
      %c0_52 = arith.constant 0 : index
      %c0_53 = arith.constant 0 : index
      %125 = vector.load %arg4[%c0_50, %c0_51, %c0_52, %c0_53] : memref<1x1x8x5xf32, #tpu.memory_space<vmem>>, vector<1x1x8x5xf32>
      %126 = vector.shape_cast %125 : vector<1x1x8x5xf32> to vector<8x5xf32>
      %cst_54 = arith.constant dense<0xFF800000> : vector<8xf32>
      %127 = vector.multi_reduction <maximumf>, %126, %cst_54 [1] : vector<8x5xf32> to vector<8xf32>
      %128 = vector.shape_cast %127 : vector<8xf32> to vector<8x1xf32>
      %129 = vector.broadcast %128 : vector<8x1xf32> to vector<8x5xf32>
      %130 = arith.subf %126, %129 : vector<8x5xf32>
      %131 = math.exp %130 : vector<8x5xf32>
      %cst_55 = arith.constant dense<0.000000e+00> : vector<8xf32>
      %132 = vector.multi_reduction <add>, %131, %cst_55 [1] : vector<8x5xf32> to vector<8xf32>
      %133 = vector.shape_cast %132 : vector<8xf32> to vector<8x1xf32>
      %134 = math.log %133 : vector<8x1xf32>
      %135 = arith.addf %128, %134 : vector<8x1xf32>
      %136 = vector.broadcast %135 : vector<8x1xf32> to vector<8x5xf32>
      %137 = arith.subf %126, %136 : vector<8x5xf32>
      %138 = tpu.iota {dimensions = array<i32: 1>} : vector<8x5xi32>
      %c0_56 = arith.constant 0 : index
      %c0_57 = arith.constant 0 : index
      %c0_58 = arith.constant 0 : index
      %139 = vector.load %arg5[%c0_56, %c0_57, %c0_58] : memref<1x8x1xi32, #tpu.memory_space<vmem>>, vector<1x8x1xi32>
      %140 = vector.shape_cast %139 : vector<1x8x1xi32> to vector<8x1xi32>
      %141 = vector.broadcast %140 : vector<8x1xi32> to vector<8x5xi32>
      %142 = arith.cmpi eq, %141, %138 : vector<8x5xi32>
      %143 = arith.extui %142 : vector<8x5xi1> to vector<8x5xi32>
      %144 = arith.sitofp %143 : vector<8x5xi32> to vector<8x5xf32>
      %c0_59 = arith.constant 0 : index
      %c0_60 = arith.constant 0 : index
      %145 = vector.load %arg6[%c0_59, %c0_60] : memref<1x5xf32, #tpu.memory_space<vmem>>, vector<1x5xf32>
      %146 = vector.broadcast %145 : vector<1x5xf32> to vector<8x5xf32>
      %147 = arith.mulf %144, %146 : vector<8x5xf32>
      %cst_61 = arith.constant dense<0.000000e+00> : vector<8xf32>
      %148 = vector.multi_reduction <add>, %147, %cst_61 [1] : vector<8x5xf32> to vector<8xf32>
      %149 = vector.shape_cast %148 : vector<8xf32> to vector<8x1xf32>
      %150 = arith.mulf %144, %137 : vector<8x5xf32>
      %cst_62 = arith.constant dense<0.000000e+00> : vector<8xf32>
      %151 = vector.multi_reduction <add>, %150, %cst_62 [1] : vector<8x5xf32> to vector<8xf32>
      %152 = vector.shape_cast %151 : vector<8xf32> to vector<8x1xf32>
      %cst_63 = arith.constant 0.000000e+00 : f32
      %153 = vector.broadcast %cst_63 : f32 to vector<8x1xf32>
      %154 = arith.subf %153, %152 : vector<8x1xf32>
      %155 = vector.shape_cast %149 : vector<8x1xf32> to vector<1x8x1xf32>
      %cst_64 = arith.constant dense<0.000000e+00> : vector<1xf32>
      %156 = vector.multi_reduction <add>, %155, %cst_64 [1, 2] : vector<1x8x1xf32> to vector<1xf32>
      %157 = vector.shape_cast %156 : vector<1xf32> to vector<1x1x1xf32>
      %158 = vector.extract %157[0, 0, 0] : f32 from vector<1x1x1xf32>
      %159 = vector.broadcast %158 : f32 to vector<1x1xf32>
      %cst_65 = arith.constant 9.99999996E-13 : f32
      %160 = vector.broadcast %cst_65 : f32 to vector<1x1xf32>
      %161 = arith.maximumf %159, %160 : vector<1x1xf32>
      %162 = arith.mulf %149, %154 : vector<8x1xf32>
      %163 = vector.shape_cast %162 : vector<8x1xf32> to vector<1x8x1xf32>
      %cst_66 = arith.constant dense<0.000000e+00> : vector<1xf32>
      %164 = vector.multi_reduction <add>, %163, %cst_66 [1, 2] : vector<1x8x1xf32> to vector<1xf32>
      %165 = vector.shape_cast %164 : vector<1xf32> to vector<1x1x1xf32>
      %166 = vector.extract %165[0, 0, 0] : f32 from vector<1x1x1xf32>
      %167 = vector.broadcast %166 : f32 to vector<1x1xf32>
      %168 = arith.divf %167, %161 : vector<1x1xf32>
      %169 = tpu.iota {dimensions = array<i32: 0>} : vector<8x1xi32>
      %170 = vector.broadcast %1 : i32 to vector<8x1xi32>
      %171 = arith.cmpi slt, %169, %170 : vector<8x1xi32>
      %172 = arith.extui %171 : vector<8x1xi1> to vector<8x1xi32>
      %173 = arith.sitofp %172 : vector<8x1xi32> to vector<8x1xf32>
      %174 = arith.sitofp %1 : i32 to f32
      %175 = arith.index_cast %arg2 : i32 to index
      %c0_67 = arith.constant 0 : index
      %c0_68 = arith.constant 0 : index
      %176 = vector.load %arg17[%175, %c0_67, %c0_68] : memref<2x8x1xf32, #tpu.memory_space<vmem>>, vector<1x8x1xf32>
      %177 = vector.shape_cast %176 : vector<1x8x1xf32> to vector<8x1xf32>
      %178 = arith.index_cast %arg2 : i32 to index
      %c0_69 = arith.constant 0 : index
      %c0_70 = arith.constant 0 : index
      %179 = vector.load %arg11[%178, %c0_69, %c0_70] : memref<2x8x1xf32, #tpu.memory_space<vmem>>, vector<1x8x1xf32>
      %180 = vector.shape_cast %179 : vector<1x8x1xf32> to vector<8x1xf32>
      %181 = arith.index_cast %arg2 : i32 to index
      %c0_71 = arith.constant 0 : index
      %c0_72 = arith.constant 0 : index
      %182 = vector.load %arg12[%181, %c0_71, %c0_72] : memref<2x8x1xf32, #tpu.memory_space<vmem>>, vector<1x8x1xf32>
      %183 = vector.shape_cast %182 : vector<1x8x1xf32> to vector<8x1xf32>
      %184 = arith.index_cast %arg2 : i32 to index
      %c0_73 = arith.constant 0 : index
      %c0_74 = arith.constant 0 : index
      %185 = vector.load %arg13[%184, %c0_73, %c0_74] : memref<2x8x1xf32, #tpu.memory_space<vmem>>, vector<1x8x1xf32>
      %186 = vector.shape_cast %185 : vector<1x8x1xf32> to vector<8x1xf32>
      %187 = arith.index_cast %arg2 : i32 to index
      %c0_75 = arith.constant 0 : index
      %c0_76 = arith.constant 0 : index
      %188 = vector.load %arg14[%187, %c0_75, %c0_76] : memref<2x8x1xf32, #tpu.memory_space<vmem>>, vector<1x8x1xf32>
      %189 = vector.shape_cast %188 : vector<1x8x1xf32> to vector<8x1xf32>
      %190 = arith.index_cast %arg2 : i32 to index
      %c0_77 = arith.constant 0 : index
      %c0_78 = arith.constant 0 : index
      %191 = vector.load %arg15[%190, %c0_77, %c0_78] : memref<2x8x1xf32, #tpu.memory_space<vmem>>, vector<1x8x1xf32>
      %192 = vector.shape_cast %191 : vector<1x8x1xf32> to vector<8x1xf32>
      %193 = arith.index_cast %arg2 : i32 to index
      %c0_79 = arith.constant 0 : index
      %c0_80 = arith.constant 0 : index
      %194 = vector.load %arg16[%193, %c0_79, %c0_80] : memref<2x8x1xf32, #tpu.memory_space<vmem>>, vector<1x8x1xf32>
      %195 = vector.shape_cast %194 : vector<1x8x1xf32> to vector<8x1xf32>
      %196 = arith.mulf %177, %173 : vector<8x1xf32>
      %197 = vector.shape_cast %196 : vector<8x1xf32> to vector<1x8x1xf32>
      %cst_81 = arith.constant dense<0.000000e+00> : vector<1xf32>
      %198 = vector.multi_reduction <add>, %197, %cst_81 [1, 2] : vector<1x8x1xf32> to vector<1xf32>
      %199 = vector.shape_cast %198 : vector<1xf32> to vector<1x1x1xf32>
      %200 = vector.extract %199[0, 0, 0] : f32 from vector<1x1x1xf32>
      %201 = vector.broadcast %200 : f32 to vector<1x1xf32>
      %cst_82 = arith.constant 3.200000e+02 : f32
      %202 = arith.mulf %174, %cst_82 : f32
      %cst_83 = arith.constant 1.000000e+00 : f32
      %203 = arith.maximumf %202, %cst_83 : f32
      %204 = vector.broadcast %203 : f32 to vector<1x1xf32>
      %205 = arith.divf %201, %204 : vector<1x1xf32>
      %cst_84 = arith.constant 2.000000e+00 : f32
      %206 = vector.broadcast %cst_84 : f32 to vector<8x1xf32>
      %207 = arith.mulf %206, %180 : vector<8x1xf32>
      %cst_85 = arith.constant 1.000000e+00 : f32
      %208 = vector.broadcast %cst_85 : f32 to vector<8x1xf32>
      %209 = arith.addf %207, %208 : vector<8x1xf32>
      %210 = arith.addf %183, %186 : vector<8x1xf32>
      %cst_86 = arith.constant 1.000000e+00 : f32
      %211 = vector.broadcast %cst_86 : f32 to vector<8x1xf32>
      %212 = arith.addf %210, %211 : vector<8x1xf32>
      %213 = arith.divf %209, %212 : vector<8x1xf32>
      %cst_87 = arith.constant 1.000000e+00 : f32
      %214 = vector.broadcast %cst_87 : f32 to vector<8x1xf32>
      %215 = arith.subf %214, %213 : vector<8x1xf32>
      %216 = arith.mulf %215, %173 : vector<8x1xf32>
      %217 = vector.shape_cast %216 : vector<8x1xf32> to vector<1x8x1xf32>
      %cst_88 = arith.constant dense<0.000000e+00> : vector<1xf32>
      %218 = vector.multi_reduction <add>, %217, %cst_88 [1, 2] : vector<1x8x1xf32> to vector<1xf32>
      %219 = vector.shape_cast %218 : vector<1xf32> to vector<1x1x1xf32>
      %220 = vector.extract %219[0, 0, 0] : f32 from vector<1x1x1xf32>
      %221 = vector.broadcast %220 : f32 to vector<1x1xf32>
      %cst_89 = arith.constant 1.000000e+00 : f32
      %222 = arith.maximumf %174, %cst_89 : f32
      %223 = vector.broadcast %222 : f32 to vector<1x1xf32>
      %224 = arith.divf %221, %223 : vector<1x1xf32>
      %225 = arith.addf %195, %192 : vector<8x1xf32>
      %226 = arith.subf %225, %189 : vector<8x1xf32>
      %cst_90 = arith.constant 9.99999997E-7 : f32
      %227 = vector.broadcast %cst_90 : f32 to vector<8x1xf32>
      %228 = arith.addf %226, %227 : vector<8x1xf32>
      %229 = arith.divf %189, %228 : vector<8x1xf32>
      %c0_91 = arith.constant 0 : index
      %c0_92 = arith.constant 0 : index
      %c0_93 = arith.constant 0 : index
      %c0_94 = arith.constant 0 : index
      %230 = vector.load %arg9[%c0_91, %c0_92, %c0_93, %c0_94] : memref<1x1x8x1xf32, #tpu.memory_space<vmem>>, vector<1x1x8x1xf32>
      %231 = vector.shape_cast %230 : vector<1x1x8x1xf32> to vector<8x1xf32>
      %cst_95 = arith.constant 5.000000e-01 : f32
      %232 = vector.broadcast %cst_95 : f32 to vector<8x1xf32>
      %233 = arith.cmpf ogt, %229, %232 : vector<8x1xf32>
      %234 = arith.extui %233 : vector<8x1xi1> to vector<8x1xi32>
      %235 = arith.sitofp %234 : vector<8x1xi32> to vector<8x1xf32>
      %236 = arith.mulf %235, %173 : vector<8x1xf32>
      %237 = vector.shape_cast %236 : vector<8x1xf32> to vector<1x8x1xf32>
      %cst_96 = arith.constant dense<0.000000e+00> : vector<1xf32>
      %238 = vector.multi_reduction <add>, %237, %cst_96 [1, 2] : vector<1x8x1xf32> to vector<1xf32>
      %239 = vector.shape_cast %238 : vector<1xf32> to vector<1x1x1xf32>
      %240 = vector.extract %239[0, 0, 0] : f32 from vector<1x1x1xf32>
      %241 = vector.broadcast %240 : f32 to vector<1x1xf32>
      %242 = arith.subf %231, %229 : vector<8x1xf32>
      %243 = arith.mulf %242, %242 : vector<8x1xf32>
      %244 = arith.mulf %236, %243 : vector<8x1xf32>
      %245 = vector.shape_cast %244 : vector<8x1xf32> to vector<1x8x1xf32>
      %cst_97 = arith.constant dense<0.000000e+00> : vector<1xf32>
      %246 = vector.multi_reduction <add>, %245, %cst_97 [1, 2] : vector<1x8x1xf32> to vector<1xf32>
      %247 = vector.shape_cast %246 : vector<1xf32> to vector<1x1x1xf32>
      %248 = vector.extract %247[0, 0, 0] : f32 from vector<1x1x1xf32>
      %249 = vector.broadcast %248 : f32 to vector<1x1xf32>
      %cst_98 = arith.constant 1.000000e+00 : f32
      %250 = vector.broadcast %cst_98 : f32 to vector<1x1xf32>
      %251 = arith.maximumf %241, %250 : vector<1x1xf32>
      %252 = arith.divf %249, %251 : vector<1x1xf32>
      %cst_99 = arith.constant 0.000000e+00 : f32
      %253 = vector.broadcast %cst_99 : f32 to vector<1x1xf32>
      %254 = arith.cmpf ogt, %241, %253 : vector<1x1xf32>
      %cst_100 = arith.constant 0.000000e+00 : f32
      %255 = vector.broadcast %cst_100 : f32 to vector<1x1xf32>
      %256 = arith.select %254, %252, %255 : vector<1x1xi1>, vector<1x1xf32>
      %c0_101 = arith.constant 0 : index
      %257 = arith.index_cast %arg2 : i32 to index
      %c0_102 = arith.constant 0 : index
      %c0_103 = arith.constant 0 : index
      %258 = vector.load %arg10[%c0_101, %257, %c0_102, %c0_103] : memref<1x2x1x4xf32, #tpu.memory_space<vmem>>, vector<1x1x1x1xf32>
      %259 = vector.shape_cast %258 : vector<1x1x1x1xf32> to vector<1x1xf32>
      %260 = vector.shape_cast %168 : vector<1x1xf32> to vector<1x1x1x1xf32>
      tpu.vector_store %arg10[%c0_101, %257, %c0_102, %c0_103], %260 {strides = array<i32>} : memref<1x2x1x4xf32, #tpu.memory_space<vmem>>, vector<1x1x1x1xf32>,
      %c0_104 = arith.constant 0 : index
      %261 = arith.index_cast %arg2 : i32 to index
      %c0_105 = arith.constant 0 : index
      %c1 = arith.constant 1 : index
      %262 = vector.load %arg10[%c0_104, %261, %c0_105, %c1] : memref<1x2x1x4xf32, #tpu.memory_space<vmem>>, vector<1x1x1x1xf32>
      %263 = vector.shape_cast %262 : vector<1x1x1x1xf32> to vector<1x1xf32>
      %264 = vector.shape_cast %205 : vector<1x1xf32> to vector<1x1x1x1xf32>
      tpu.vector_store %arg10[%c0_104, %261, %c0_105, %c1], %264 {strides = array<i32>} : memref<1x2x1x4xf32, #tpu.memory_space<vmem>>, vector<1x1x1x1xf32>,
      %c0_106 = arith.constant 0 : index
      %265 = arith.index_cast %arg2 : i32 to index
      %c0_107 = arith.constant 0 : index
      %c2 = arith.constant 2 : index
      %266 = vector.load %arg10[%c0_106, %265, %c0_107, %c2] : memref<1x2x1x4xf32, #tpu.memory_space<vmem>>, vector<1x1x1x1xf32>
      %267 = vector.shape_cast %266 : vector<1x1x1x1xf32> to vector<1x1xf32>
      %268 = vector.shape_cast %224 : vector<1x1xf32> to vector<1x1x1x1xf32>
      tpu.vector_store %arg10[%c0_106, %265, %c0_107, %c2], %268 {strides = array<i32>} : memref<1x2x1x4xf32, #tpu.memory_space<vmem>>, vector<1x1x1x1xf32>,
      %c0_108 = arith.constant 0 : index
      %269 = arith.index_cast %arg2 : i32 to index
      %c0_109 = arith.constant 0 : index
      %c3 = arith.constant 3 : index
      %270 = vector.load %arg10[%c0_108, %269, %c0_109, %c3] : memref<1x2x1x4xf32, #tpu.memory_space<vmem>>, vector<1x1x1x1xf32>
      %271 = vector.shape_cast %270 : vector<1x1x1x1xf32> to vector<1x1xf32>
      %272 = vector.shape_cast %256 : vector<1x1xf32> to vector<1x1x1x1xf32>
      tpu.vector_store %arg10[%c0_108, %269, %c0_109, %c3], %272 {strides = array<i32>} : memref<1x2x1x4xf32, #tpu.memory_space<vmem>>, vector<1x1x1x1xf32>,
    } else {
    }
    return
  }
  func.func @transform_0(%arg0: i32, %arg1: i32, %arg2: i32, %arg3: memref<2xi32, #tpu.memory_space<smem>>) -> (i32, i32, i32, i32) {
    %c0_i32 = arith.constant 0 : i32
    %c0_i32_0 = arith.constant 0 : i32
    %c0_i32_1 = arith.constant 0 : i32
    return %arg0, %arg2, %c0_i32, %c0_i32_0 : i32, i32, i32, i32
  }
  func.func @transform_1(%arg0: i32, %arg1: i32, %arg2: i32, %arg3: memref<2xi32, #tpu.memory_space<smem>>) -> (i32, i32, i32) {
    %c0_i32 = arith.constant 0 : i32
    %c0_i32_0 = arith.constant 0 : i32
    %c0_i32_1 = arith.constant 0 : i32
    return %arg0, %c0_i32, %c0_i32_0 : i32, i32, i32
  }
  func.func @transform_2(%arg0: i32, %arg1: i32, %arg2: i32, %arg3: memref<2xi32, #tpu.memory_space<smem>>) -> (i32, i32) {
    %c0_i32 = arith.constant 0 : i32
    %c0_i32_0 = arith.constant 0 : i32
    %c0_i32_1 = arith.constant 0 : i32
    return %c0_i32, %c0_i32_0 : i32, i32
  }
  func.func @transform_3(%arg0: i32, %arg1: i32, %arg2: i32, %arg3: memref<2xi32, #tpu.memory_space<smem>>) -> (i32, i32, i32, i32) {
    %c0_i32 = arith.constant 0 : i32
    %c0_i32_0 = arith.constant 0 : i32
    return %arg0, %arg2, %c0_i32, %arg1 : i32, i32, i32, i32
  }
  func.func @transform_4(%arg0: i32, %arg1: i32, %arg2: i32, %arg3: memref<2xi32, #tpu.memory_space<smem>>) -> (i32, i32, i32) {
    %c0_i32 = arith.constant 0 : i32
    %c0_i32_0 = arith.constant 0 : i32
    return %arg0, %c0_i32, %arg1 : i32, i32, i32
  }
  func.func @transform_5(%arg0: i32, %arg1: i32, %arg2: i32, %arg3: memref<2xi32, #tpu.memory_space<smem>>) -> (i32, i32, i32, i32) {
    %c0_i32 = arith.constant 0 : i32
    %c0_i32_0 = arith.constant 0 : i32
    %c0_i32_1 = arith.constant 0 : i32
    return %arg0, %arg2, %c0_i32, %c0_i32_0 : i32, i32, i32, i32
  }
  func.func @transform_6(%arg0: i32, %arg1: i32, %arg2: i32, %arg3: memref<2xi32, #tpu.memory_space<smem>>) -> (i32, i32, i32, i32) {
    %c0_i32 = arith.constant 0 : i32
    %c0_i32_0 = arith.constant 0 : i32
    %c0_i32_1 = arith.constant 0 : i32
    %c0_i32_2 = arith.constant 0 : i32
    return %arg0, %c0_i32, %c0_i32_0, %c0_i32_1 : i32, i32, i32, i32
  }
}

</mosaic_0001>

<bundles_post_ra>
// kernel: tpu_custom_call.1
= control target key start
LH: loop header
LB: loop body
LE: loop exit
PB: predicated region body
PF: predicated region fallthrough
CT: control target
= control target key end

     0   :  { %s1717_s0 = inlined_call_operand.vmem [shape: s32[2], index: 0, kind: input, shape index: {}]   ;;  %s1718_s1 = inlined_call_operand.vmem [shape: f32[2,2,8,5], index: 1, kind: input, shape index: {}]   ;;  %s1719_s2 = inlined_call_operand.vmem [shape: s32[2,8,1], index: 2, kind: input, shape index: {}]   ;;  %s1720_s3 = inlined_call_operand.vmem [shape: f32[1,5], index: 3, kind: input, shape index: {}]   ;;  %s1721_s4 = inlined_call_operand.vmem [shape: f32[2,2,8,320], index: 4, kind: input, shape index: {}]   ;;  %s1722_s5 = inlined_call_operand.hbm [shape: f32[2,8,320], index: 5, kind: input, shape index: {}]   ;;  %s1723_s6 = inlined_call_operand.vmem [shape: f32[2,2,8,1], index: 6, kind: input, shape index: {}]   ;;  %s1724_s7 = inlined_call_operand.hbm [shape: f32[2,2,1,4], index: 7, kind: output, shape index: {}]  }
   0x1   :  { %1740 = sst [smem:[#allocation32_spill]] %s1719_s2  ;;  %s12_s26 = sshll.u32 %s1717_s0, 4  ;;  %s13_s26 = int_to_ptr.vmem [resolvable:$true] %s12_s26 }
   0x2   :  { %1741 = sst [smem:[#allocation33_spill]] %s1720_s3  ;;  %s1105_s27 = scalar_lea.vmem %s13_s26, 16 }
   0x3   :  { %1742 = sst [smem:[#allocation34_spill]] %s1721_s4  ;;  %p1106_p0 = scmp.ne.s32.totalorder %s13_s26, %s1105_s27 }
   0x4   :  { %1743 = sst [smem:[#allocation35_spill]] %s1722_s5  ;;  %p1110_p1 = scmp.lt.s32.totalorder %s13_s26, %s13_s26 }
   0x5   :  { %1744 = sst [smem:[#allocation36_spill]] %s1724_s7  ;;  %p1111_p2 = scmp.lt.s32.totalorder %s1105_s27, %s1105_s27 }
   0x7   :  { %p1112_p3 = por %p1111_p2, %p1110_p1 }
   0x9   :  { %p1113_p4 = pnand %p1112_p3, %p1106_p0 }
   0xb   :  { %1116 = shalt.err (!%p1113_p4)  }
   0xc   :  { %s1289_s28 = smov [#allocation10]  }
   0xd   :  { %15 = dma.vmem_to_smem %s13_s26, 16, %s1289_s28, [#allocation9] }
   0xe   :  { %1227 = dma.done.wait [#allocation9], 16 }
   0xf   :  { %1228 = vsyncadd [#allocation9], 4294967280 }
  0x10   :  { %17 = sfence }
  0x11   :  { %18 = vsyncpa [#allocation12], 0 }
  0x12   :  { %20 = vsyncpa [#allocation12 + $0x1], 0 }
  0x13   :  { %21 = vsyncpa [#allocation13], 0 }
  0x14   :  { %23 = vsyncpa [#allocation13 + $0x1], 0  ;;  %s1342_s29 = smov 0   ;;  %s1344_s0 = smov 0  }
  0x15   :  { %s1346_s30 = smov 0   ;;  %s1348_s8 = smov 0  }
  0x16   :  { %s1350_s9 = smov 0   ;;  %s1352_s10 = smov 0  }
  0x17   :  { %s1354_s11 = smov 0   ;;  %s1356_s12 = smov 0  }
  0x18   :  { %s1358_s13 = smov 0   ;;  %s1360_s14 = smov 0  }
  0x19   :  { %s1362_s15 = smov 0   ;;  %s1364_s16 = smov 0  }
  0x1a   :  { %s1366_s17 = smov 0  }
  0x1b LB: > { %1745 = sst [smem:[#allocation18_spill]] %s1239_s29  ;;  %s907_s18 = sadd.s32 4294967295, %s1287_s17   ;;  %s1287_s17 = sphi %s1366_s17, %s29_s17   ;;  %s1283_s16 = sphi %s1364_s16, %s1789_s16   ;;  %s1279_s15 = sphi %s1362_s15, %s1788_s15   ;;  %s1275_s14 = sphi %s1360_s14, %s1787_s14   ;;  %s1271_s13 = sphi %s1358_s13, %s1786_s13   ;;  %s1267_s12 = sphi %s1356_s12, %s1785_s12   ;;  %s1263_s11 = sphi %s1354_s11, %s1792_s11   ;;  %s1259_s10 = sphi %s1352_s10, %s1783_s10   ;;  %s1255_s9 = sphi %s1350_s9, %s1782_s9   ;;  %s1251_s8 = sphi %s1348_s8, %s1781_s8   ;;  %s1247_s30 = sphi %s1346_s30, %s1780_s30   ;;  %s1243_s0 = sphi %s1344_s0, %s1791_s0   ;;  %s1239_s29 = sphi %s1342_s29, %s1790_s29  }
  0x1c   : > { %1746 = sst [smem:[#allocation19_spill]] %s1247_s30  ;;  %s908_s19 = sadd.s32 4294967294, %s1287_s17  }
  0x1d   : > { %1747 = sst [smem:[#allocation20_spill]] %s1255_s9  ;;  %s41_s20 = sadd.s32 1, %s1275_s14 }
  0x1e   : > { %1748 = sst [smem:[#allocation21_spill]] %s1259_s10  ;;  %s44_s21 = sadd.s32 1, %s1279_s15 }
  0x1f   : > { %1749 = sst [smem:[#allocation22_spill]] %s1275_s14  ;;  %p42_p5 = scmp.ge.s32.totalorder %s41_s20, 2 }
  0x20   : > { %1750 = sst [smem:[#allocation23_spill]] %s1279_s15  ;;  %s48_s22 = sadd.s32 1, %s1283_s16 }
  0x21   : > { %1751 = sst [smem:[#allocation24_spill]] %s1283_s16  ;;  %s162_s23 = sadd.s32 1, %s1259_s10 }
  0x22   : > { %p169_p6 = scmp.ne.s32.totalorder %s1259_s10, %s1255_s9  ;;  %s1794_s20 = smov (%p42_p5, %s41_s20), 0 }
  0x23   : > { %1752 = sst [smem:[#allocation25_spill]] %s1794_s20  ;;  %s1796_s21 = smov (!%p42_p5, %s44_s21), %s1279_s15 }
  0x24   : > { %p170_p7 = scmp.eq.s32.totalorder %s1287_s17, 0  ;;  %p175_p8 = scmp.ne.s32.totalorder %s1255_s9, %s1251_s8 }
  0x25   : > { %p46_p9 = scmp.ge.s32.totalorder %s1796_s21, 3  ;;  %p176_p10 = scmp.eq.s32.totalorder %s907_s18, 0 }
  0x26   : > { %p1421_p11 = por %p170_p7, %p169_p6  ;;  %s216_s25 = sadd.s32 1, %s1247_s30 }
  0x27   : > { %s1798_s21 = smov (%p46_p9, %s1796_s21), 0  ;;  %s1800_s22 = smov (!%p46_p9, %s48_s22), %s1283_s16 }
  0x28   : > { %1754 = sst [smem:[#allocation26_spill]] %s1798_s21  ;;  %s158_s26 = ssub.s32 %s1279_s15, %s1798_s21 }
  0x29   : > { %p1431_p12 = por %p176_p10, %p175_p8  ;;  %p50_p13 = scmp.ge.s32.totalorder %s1800_s22, 2 }
  0x2a   : > { %p226_p0 = scmp.ne.s32.totalorder %s1247_s30, %s1243_s0  ;;  %p227_p1 = scmp.eq.s32.totalorder %s907_s18, 11 }
  0x2b   : > { %p232_p2 = scmp.ne.s32.totalorder %s1243_s0, %s1239_s29  ;;  %s1802_s22 = smov (%p50_p13, %s1800_s22), 0 }
  0x2c   : > { %1756 = sst [smem:[#allocation27_spill]] %s1802_s22  ;;  %p1441_p3 = por %p227_p1, %p226_p0 }
  0x2d   : > { %p233_p4 = scmp.eq.s32.totalorder %s908_s19, 11  ;;  %s157_s8 = ssub.s32 %s1283_s16, %s1802_s22 }
  0x2e   : > { %s1757_s28 = scalar_select %p1441_p3, 1, 0 }
  0x2f   : > { %s159_s21 = sor.u32 %s158_s26, %s157_s8  ;;  %p214_p5 = scmp.eq.s32.totalorder %s157_s8, 0 }
  0x30   : > { %1758 = sst [smem:[#allocation28_spill]] %s1757_s28  ;;  %p160_p6 = scmp.eq.s32.totalorder %s159_s21, 0 }
  0x31   : > { %p1447_p7 = por %p233_p4, %p232_p2  ;;  %p967_p8 = scmp.lt.s32.totalorder %s1287_s17, 12 }
  0x32   : > { %s1452_s18 = scalar_select %p214_p5, %s1247_s30, %s216_s25  }
  0x33   : > { %s1759_s20 = scalar_select %p1447_p7, 1, 0 }
  0x34   : > { %1761 = sst [smem:[#allocation30_spill]] %s1452_s18  ;;  %s289_s29 = sand.u32 1, %s1259_s10  }
  0x35   : > { %1760 = sst [smem:[#allocation29_spill]] %s1759_s20  ;;  %s911_s7 = sshll.u32 %s289_s29, 3 }
  0x36   : > { %s1455_s14 = scalar_select %p160_p6, %s1259_s10, %s162_s23  }
  0x37   : > { %s940_s3 = smul.u32 3, %s1283_s16  ;;  %s293_s28 = scalar_lea.vmem [#allocation11], %s911_s7 }
  0x38   : > { %1762 = sst [smem:[#allocation31_spill]] %s1455_s14  ;;  %s302_s4 = sshll.u32 %s293_s28, 4  ;;  %s1467_s4 = int_to_ptr.vmem [resolvable:$true] %s302_s4 }
  0x39   : > { %p1462_p9 = pnand %p967_p8, %p1421_p11  ;;  %s298_s21 = sadd.s32 %s1279_s15, %s940_s3 }
  0x3a   : > { %s912_s25 = sshll.u32 %s298_s21, 7  ;;  %s1764_s5 = sld [smem:[#allocation35_spill]] }
  0x3b   : > { %s290_s7 = scalar_lea.sflag [#allocation12], %s289_s29  ;;  %p1119_p13 = pneg %p1462_p9 }
  0x40   : > { %s1472_s8 = scalar_lea.hbm %s1764_s5, %s912_s25  ;;  %s1122_s21 = scalar_lea.hbm %s1764_s5, 768 }
  0x41   : > { %s1117_s24 = scalar_lea.hbm %s1472_s8, 128  ;;  %p1123_p2 = scmp.lt.u32.totalorder %s1472_s8, %s1764_s5 }
  0x42   : > { %p1118_p11 = scmp.ne.s32.totalorder %s1472_s8, %s1117_s24  ;;  %p1124_p4 = scmp.lt.u32.totalorder %s1122_s21, %s1117_s24 }
  0x43   : > { %p1126_p6 = scmp.lt.u32.totalorder %s1117_s24, %s1472_s8 }
  0x44   : > { %p1120_p0 = pnand %p1119_p13, %p1118_p11  ;;  %p1125_p5 = por %p1124_p4, %p1123_p2 }
  0x46   : > { %p1121_p1 = pneg %p1120_p0  ;;  %p1127_p8 = por %p1126_p6, %p1125_p5 }
  0x48   : > { %p1128_p10 = pnand %p1127_p8, %p1121_p1 }
  0x4a   : > { %1131 = shalt.err (!%p1128_p10)
}
  0x4b   : > { %s1132_s29 = scalar_lea.vmem %s1467_s4, 128  ;;  %s1290_s23 = smov [#allocation11]  }
  0x4c   : > { %p1133_p11 = scmp.ne.s32.totalorder %s1467_s4, %s1132_s29  ;;  %s1137_s3 = sshll.u32 %s1290_s23, 4  ;;  %s1138_s3 = int_to_ptr.vmem [resolvable:$false] %s1137_s3 }
  0x4d   : > { %s1139_s28 = scalar_lea.vmem %s1138_s3, 256  ;;  %p1140_p3 = scmp.lt.s32.totalorder %s1467_s4, %s1138_s3 }
  0x4e   : > { %p1135_p0 = pnand %p1133_p11, %p1119_p13  ;;  %p1141_p2 = scmp.lt.s32.totalorder %s1139_s28, %s1132_s29 }
  0x50   : > { %p1136_p7 = pneg %p1135_p0  ;;  %p1142_p4 = por %p1141_p2, %p1140_p3 }
  0x52   : > { %p1143_p5 = pnand %p1142_p4, %p1136_p7 }
  0x54   : > { %1146 = shalt.err (!%p1143_p5)
}
  0x55   : > { %962 = dma.hbm_to_vmem [thread:$0]  (!%p1462_p9), %s1472_s8, 128, %s1467_s4, %s290_s7  }
  0x56   : > { %p318_p10 = scmp.lt.s32.totalorder %s1287_s17, 13  ;;  %p1765_p1 = scmp.ge.s32.totalorder %s1287_s17, 1 }
  0x58   : > { %p319_p13 = pnand %p1765_p1, %p318_p10 }
  0x59   : > { %s324_s24 = sand.u32 (!%p319_p13), 1, %s1255_s9  }
  0x5a   : > { %322 = sbr.rel (%p319_p13) target bundleno = 895 (0x37f), region = 44  ;;  %s1504_s21 = sshll.u32 (!%p319_p13), %s324_s24, 3 }
  0x5b   : > { %s325_s25 = scalar_lea.sflag (!%p319_p13), [#allocation12], %s324_s24 }
  0x61   : > { %1230 = dma.done.wait (%p1431_p12), %s325_s25, 128  }
  0x62   : > { %1232 = vsyncadd (%p1431_p12), %s325_s25, 4294967168  ;;  %s1734_s4 = sand.u32 1, %s1243_s0   ;;  %p389_p3 = scmp.lt.s32.totalorder %s1271_s13, 1 }
  0x63   : > { %s1514_s19 = sld [smem:[#allocation10 + %s1271_s13]]  ;;  %s1518_s8 = sshll.u32 %s1734_s4, 1 }
  0x64   : > { %p391_p7 = scmp.lt.s32.totalorder %s1263_s11, 1  ;;  %s1766_s2 = sld [smem:[#allocation32_spill]] }
  0x65   : > { %s390_s7 = scalar_select %p389_p3, %s1271_s13, 1 }
  0x66   : > { %s392_s27 = scalar_select %p391_p7, %s1263_s11, 1 }
  0x67   : > { %s916_s29 = sshll.u32 %s390_s7, 1  ;;  %s918_s23 = sshll.u32 %s390_s7, 3 }
  0x68   : > { %s394_s3 = sadd.s32 %s916_s29, %s392_s27  ;;  %p405_p12 = scmp.lt.s32.totalorder %s1267_s12, 2 }
  0x69   : > { %s917_s26 = sshll.u32 %s394_s3, 3  ;;  %s941_s4 = smul.u32 3, %s392_s27 }
  0x6a   : > { %s1526_s25 = scalar_lea.vmem %s1766_s2, %s918_s23  ;;  %s1532_s16 = scalar_lea.vmem %s1718_s1, %s917_s26 }
  0x6b   : > { %s406_s15 = scalar_select %p405_p12, %s1267_s12, 2 }
  0x6c   : > { %s942_s14 = smul.u32 6, %s390_s7  ;;  %s1538_s18 = scalar_lea.vmem %s1723_s6, %s917_s26 }
  0x6d   : > { %s408_s29 = sadd.s32 %s941_s4, %s406_s15  ;;  %s1767_s3 = sld [smem:[#allocation34_spill]] }
  0x6e   : > { %s410_s30 = sadd.s32 %s942_s14, %s408_s29  ;;  %s388_s20 = scalar_lea.vmem [#allocation14], %s1518_s8 }
  0x6f   : > { %s919_s28 = sshll.u32 %s410_s30, 3  ;;  %p922_p9 = scmp.ne.s32.totalorder %s1267_s12, 0 }
  0x70   : > { %s923_s5 = sshll.u32 (!%p922_p9), %s1263_s11, 3  ;;  %vm428_vm0 = vcmask (!%p922_p9), 7168   ;;  %v1291_v0 = vmov (!%p922_p9), 0.0  }
  0x71   : > { %425 = sbr.rel (%p922_p9) target bundleno = 120 (0x78), region = 52  ;;  %s427_s22 = scalar_lea.vmem (!%p922_p9), [#allocation2], %s923_s5 }
  0x72   : > { %429 = vst.msk [vmem:[%s427_s22] sm:$0xff] (!%p922_p9), %vm428_vm0, %v1291_v0  ;;  %s430_s9 = scalar_lea.vmem (!%p922_p9), [#allocation3], %s923_s5  ;;  %s432_s10 = scalar_lea.vmem (!%p922_p9), [#allocation4], %s923_s5 }
  0x73   : > { %s412_s2 = scalar_lea.vmem %s1767_s3, %s919_s28  ;;  %431 = vst.msk [vmem:[%s430_s9] sm:$0xff] (!%p922_p9), %vm428_vm0, %v1291_v0  ;;  %433 = vst.msk [vmem:[%s432_s10] sm:$0xff] (!%p922_p9), %vm428_vm0, %v1291_v0  ;;  %s434_s14 = scalar_lea.vmem (!%p922_p9), [#allocation5], %s923_s5 }
  0x74   : > { %435 = vst.msk [vmem:[%s434_s14] sm:$0xff] (!%p922_p9), %vm428_vm0, %v1291_v0  ;;  %s436_s30 = scalar_lea.vmem (!%p922_p9), [#allocation6], %s923_s5  ;;  %s438_s15 = scalar_lea.vmem (!%p922_p9), [#allocation7], %s923_s5 }
  0x75   : > { %437 = vst.msk [vmem:[%s436_s30] sm:$0xff] (!%p922_p9), %vm428_vm0, %v1291_v0  ;;  %439 = vst.msk [vmem:[%s438_s15] sm:$0xff] (!%p922_p9), %vm428_vm0, %v1291_v0  ;;  %s440_s26 = scalar_lea.vmem (!%p922_p9), [#allocation8], %s923_s5 }
  0x76   : > { %441 = vst.msk [vmem:[%s440_s26] sm:$0xff] (!%p922_p9), %vm428_vm0, %v1291_v0 }
  0x78 PF: > { %s924_s4 = sshll.u32 %s1267_s12, 7  ;;  %v445_v1 = vlaneseq  ;;  %v442_v4 = vld [vmem:[%s412_s2] sm:$0xff]  ;;  %s1768_s7 = scalar_lea.vmem [#allocation11], %s1504_s21  ;;  %v1292_v10 = vmov 0.0   ;;  %vm491_vm6 = vcmask 7168  }
  0x79   : > { %v447_v2 = vstv %s924_s4  ;;  %v443_v6 = vld [vmem:[%s1768_s7] sm:$0xff]  ;;  %s1557_s2 = sshll.u32 %s1263_s11, 3  ;;  %p929_p6 = scmp.ne.s32.totalorder %s1267_s12, 2 }
  0x7a   : > { %v1548_v3 = vand.u32 127, %v445_v1  ;;  %s1560_s21 = scalar_lea.vmem [#allocation4], %s1557_s2  ;;  %s1564_s27 = scalar_lea.vmem [#allocation6], %s1557_s2  ;;  %v533_v54 = vld [vmem:[%s1532_s16] sm:$0xff] (!%p929_p6)  ;;  %vm534_vm7 = vcmask (!%p929_p6), 39936   ;;  %v1293_v57 = vmov (!%p929_p6), 0  }
  0x7b   : > { %v500_v33 = vld [vmem:[%s1560_s21] sm:$0xff]  ;;  %s1568_s29 = scalar_lea.vmem [#allocation5], %s1557_s2  ;;  %s1576_s28 = scalar_lea.vmem [#allocation7], %s1557_s2  ;;  %v535_v55 = vsel (!%p929_p6), %vm534_vm7, %v533_v54, -inf  ;;  %1087 = vset.pattern.permute.xlu1 (!%p929_p6), %v1293_v57  ;;  %1088 = vset.pattern.permute.xlu0 (!%p929_p6), %v1293_v57  ;;  %v1294_v0 = vmov (!%p929_p6), 0.0   ;;  %vm692_vm11 = vcmask (!%p929_p6), 0  }
  0x7c   : > { %v448_v5 = vadd.s32 %v447_v2, %v1548_v3  ;;  %v512_v34 = vld [vmem:[%s1564_s27] sm:$0xff]  ;;  %s1584_s23 = scalar_lea.vmem [#allocation3], %s1557_s2  ;;  %s1588_s24 = scalar_lea.vmem [#allocation2], %s1557_s2  ;;  %vm694_vm12 = vcmask (!%p929_p6), 8200   ;;  %vm696_vm13 = vcmask (!%p929_p6), 16400   ;;  %vm698_vm14 = vcmask (!%p929_p6), 24600  }
  0x7d   : > { %v506_v38 = vld [vmem:[%s1568_s29] sm:$0xff]  ;;  %s1594_s3 = scalar_lea.vmem [#allocation8], %s1557_s2  ;;  %s1295_s9 = smov (!%p929_p6), 1.0  }
  0x7e   : > { %vm449_vm1 = vcmp.lt.s32.totalorder %v448_v5, 320  ;;  %v518_v42 = vld [vmem:[%s1576_s28] sm:$0xff] }
  0x7f   : > { %v452_v7 = vsel %vm449_vm1, %v442_v4, -10000.0  ;;  %v453_v8 = vsel %vm449_vm1, %v443_v6, 0.0  ;;  %v494_v45 = vld [vmem:[%s1584_s23] sm:$0xff] }
  0x80   : > { %vm473_vm2 = vcmp.ge.f32.partialorder %v452_v7, 0.0  ;;  %v454_v9 = vand.u32 2147483647, %v452_v7  ;;  %501 = vadd.xlane.f32.xlu1 %v453_v8  ;;  %vm476_vm3 = vcmp.gt.f32.partialorder %v453_v8, 0.5  ;;  %v458_v22 = vmax.f32 %v452_v7, 0.0  ;;  %v486_v48 = vld [vmem:[%s1588_s24] sm:$0xff] }
  0x81   : > { %v925_v11 = vsel %vm473_vm2, 1.0, %v1292_v10  ;;  %vm481_vm4 = vmand %vm473_vm2, %vm476_vm3  ;;  %v926_v15 = vsel %vm476_vm3, 1.0, %v1292_v10  ;;  %v459_v23 = vmul.f32 %v453_v8, %v452_v7  ;;  %v524_v51 = vld [vmem:[%s1594_s3] sm:$0xff] }
  0x82   : > { %513 = vadd.xlane.f32.xlu0 %v925_v11  ;;  %v455_v12 = vsub.f32 0.0, %v454_v9  ;;  %v927_v13 = vsel %vm481_vm4, 1.0, %v1292_v10  ;;  %v548_v56 = vld [vmem:[%s1526_s25] sm:$0xff] (!%p929_p6)  ;;  %s1769_s25 = sld [smem:[#allocation33_spill]] (!%p929_p6) }
  0x83   : > { %v460_v30 = vsub.f32 %v458_v22, %v459_v23 }
  0x84   : > { %v456_v14 = vmul.f32 1.442695, %v455_v12  ;;  %507 = vadd.xlane.f32.xlu1 %v927_v13  ;;  %v598_v13 = vshrl.u32 (!%p929_p6), %v445_v1, 7 }
  0x86   : > { %1081 = vpow2.f32 %v456_v14  ;;  %v599_v14 = vstv (!%p929_p6), %s1514_s19 }
  0x87   : > { %vm600_vm9 = vcmp.lt.s32.totalorder (!%p929_p6), %v598_v13, %v599_v14 }
  0x88   : > { %519 = vadd.xlane.f32.xlu1 %v926_v15  ;;  %v931_v4 = vld [vmem:[%s1769_s25] ss:$0 sm:$0xff] (!%p929_p6)  ;;  %v932_v22 = vsel (!%p929_p6), %vm600_vm9, 1.0, %v1294_v0 }
  0x90   : > { %v1082_v16 = vpop.eup %1081 }
  0x91   : > { %v461_v17 = vadd.f32 1.0, %v1082_v16  ;;  %v464_v18 = vmul.f32 -0.5, %v1082_v16  ;;  %v467_v20 = vand.u32 2147483647, %v1082_v16 }
  0x93   : > { %1083 = vrcp.f32 %v461_v17  ;;  %v465_v19 = vadd.f32 1.0, %v464_v18  ;;  %vm468_vm5 = vcmp.lt.f32.partialorder %v467_v20, 0.0004427343 }
  0x94   : > { %1085 = vlog2.f32 %v461_v17 }
  0x95   : > { %v466_v26 = vmul.f32 %v1082_v16, %v465_v19 }
  0x99   : > { %550 = vperm.xlu1 (!%p929_p6), %1087, %v548_v56  }
  0x9d   : > { %v1084_v21 = vpop.eup %1083 }
  0x9e   : > { %v1086_v24 = vpop.eup %1085  ;;  %v474_v25 = vmul.f32 %v1084_v21, %v1082_v16 }
  0x9f   : > { %v463_v27 = vmul.f32 0.6931472, %v1086_v24 }
  0xa0   : > { %v475_v28 = vsel %vm473_vm2, %v1084_v21, %v474_v25 }
  0xa1   : > { %495 = vadd.xlane.f32.xlu0 %v475_v28  ;;  %v487_v29 = vmul.f32 %v475_v28, %v453_v8  ;;  %v469_v31 = vsel %vm468_vm5, %v466_v26, %v463_v27 }
  0xa2   : > { %v470_v32 = vadd.f32 %v469_v31, %v460_v30 }
  0xa5   : > { %488 = vadd.xlane.f32.xlu0 %v487_v29 }
  0xa9   : > { %525 = vadd.xlane.f32.xlu0 %v470_v32 }
  0xad   : > { %536 = vmax.xlane.f32.xlu0 (!%p929_p6), %v535_v55 }
 0x10d   : > { %v502_v35 = vpop.xlane.xlu1 %501 }
 0x10e   : > { %v503_v36 = vadd.f32 %v502_v35, %v500_v33 }
 0x10f   : > { %v514_v37 = vpop.xlane.xlu0 %513 }
 0x110   : > { %v515_v39 = vadd.f32 %v514_v37, %v512_v34  ;;  %504 = vst.msk [vmem:[%s1560_s21] sm:$0xff] %vm491_vm6, %v503_v36 }
 0x111   : > { %v508_v40 = vpop.xlane.xlu1 %507 }
 0x112   : > { %516 = vst.msk [vmem:[%s1564_s27] sm:$0xff] %vm491_vm6, %v515_v39  ;;  %v509_v41 = vadd.f32 %v508_v40, %v506_v38  ;;  %v656_v40 = vld [vmem:[%s1538_s18] sm:$0xff] (!%p929_p6)  ;;  %s603_s18 = scvt.s32.f32 (!%p929_p6), %s1514_s19  ;;  %s691_s19 = scalar_lea.vmem (!%p929_p6), %s388_s20, %s1263_s11 [#allocation14] }
 0x114   : > { %510 = vst.msk [vmem:[%s1568_s29] sm:$0xff] %vm491_vm6, %v509_v41  ;;  %s623_s22 = smul.f32 (!%p929_p6), 320.0, %s603_s18  ;;  %s647_s14 = smax.f32 (!%p929_p6), %s1295_s9, %s603_s18 }
 0x115   : > { %v520_v43 = vpop.xlane.xlu1 %519 }
 0x116   : > { %v521_v44 = vadd.f32 %v520_v43, %v518_v42  ;;  %s624_s10 = smax.f32 (!%p929_p6), %s1295_s9, %s623_s22 }
 0x117   : > { %v607_v8 = vld [vmem:[%s1560_s21] sm:$0xff] (!%p929_p6) }
 0x118   : > { %522 = vst.msk [vmem:[%s1576_s28] sm:$0xff] %vm491_vm6, %v521_v44 }
 0x119   : > { %v551_v63 = vpop.permute.xlu1 (!%p929_p6), %550  ;;  %v609_v32 = vld [vmem:[%s1564_s27] sm:$0xff] (!%p929_p6) }
 0x11a   : > { %vm552_vm8 = vcmp.eq.s32.totalorder (!%p929_p6), %v551_v63, %v1548_v3 }
 0x11b   : > { %v930_v2 = vsel (!%p929_p6), %vm552_vm8, 1.0, %v1294_v0  ;;  %v608_v35 = vld [vmem:[%s1568_s29] sm:$0xff] (!%p929_p6) }
 0x11c   : > { %v562_v5 = vmul.f32 (!%p929_p6), %v931_v4, %v930_v2 }
 0x11e   : > { %v563_v6 = vsel (!%p929_p6), %vm534_vm7, %v562_v5, 0.0 }
 0x11f   : > { %v610_v33 = vld [vmem:[%s1576_s28] sm:$0xff] (!%p929_p6) }
 0x120   : > { %v651_v34 = vadd.f32 (!%p929_p6), %v610_v33, %v609_v32  ;;  %v625_v32 = vstv (!%p929_p6), %s624_s10  ;;  %v648_v33 = vstv (!%p929_p6), %s647_s14 }
 0x122   : > { %v652_v36 = vsub.f32 (!%p929_p6), %v651_v34, %v608_v35 }
 0x124   : > { %v653_v37 = vadd.f32 (!%p929_p6), 1e-06, %v652_v36 }
 0x12e   : > { %v496_v46 = vpop.xlane.xlu0 %495 }
 0x12f   : > { %v497_v47 = vadd.f32 %v496_v46, %v494_v45 }
 0x131   : > { %498 = vst.msk [vmem:[%s1584_s23] sm:$0xff] %vm491_vm6, %v497_v47 }
 0x132   : > { %v489_v49 = vpop.xlane.xlu0 %488 }
 0x133   : > { %v490_v50 = vadd.f32 %v489_v49, %v486_v48  ;;  %532 = sbr.rel (%p929_p6) target bundleno = 866 (0x362), region = 56 }
 0x135   : > { %492 = vst.msk [vmem:[%s1588_s24] sm:$0xff] %vm491_vm6, %v490_v50 }
 0x136   : > { %v526_v52 = vpop.xlane.xlu0 %525 }
 0x137   : > { %v527_v53 = vadd.f32 %v526_v52, %v524_v51 }
 0x138   : > { %v606_v7 = vld [vmem:[%s1584_s23] sm:$0xff] (!%p929_p6) }
 0x139   : > { %528 = vst.msk [vmem:[%s1594_s3] sm:$0xff] %vm491_vm6, %v527_v53  ;;  %v630_v9 = vadd.f32 (!%p929_p6), %v607_v8, %v606_v7 }
 0x13a   : > { %v537_v58 = vpop.xlane.xlu0 %536 }
 0x13b   : > { %v538_v59 = vsub.f32 %v533_v54, %v537_v58  ;;  %v631_v10 = vadd.f32 1.0, %v630_v9 }
 0x13c   : > { %v605_v3 = vld [vmem:[%s1588_s24] sm:$0xff] }
 0x13d   : > { %v539_v60 = vmul.f32 1.442695, %v538_v59  ;;  %v628_v12 = vmul.f32 2.0, %v605_v3 }
 0x13f   : > { %1089 = vpow2.f32 %v539_v60  ;;  %v629_v16 = vadd.f32 1.0, %v628_v12 }
 0x140   : > { %v604_v23 = vld [vmem:[%s1594_s3] sm:$0xff] }
 0x141   : > { %v611_v25 = vmul.f32 %v932_v22, %v604_v23 }
 0x143   : > { %v612_v29 = vsel %vm491_vm6, %v611_v25, 0.0 }
 0x149   : > { %v1090_v61 = vpop.eup %1089 }
 0x14a   : > { %v541_v62 = vsel %vm534_vm7, %v1090_v61, 0.0 }
 0x14b   : > { %542 = vadd.xlane.f32.xlu0 %v541_v62 }
 0x14f   : > { %564 = vadd.xlane.f32.xlu0 %v563_v6 }
 0x1d8   : > { %v543_v11 = vpop.xlane.xlu0 %542 }
 0x1d9   : > { %1091 = vlog2.f32 %v543_v11 }
 0x1da   : > { %1093 = vrcp.f32 %v631_v10 }
 0x1db   : > { %1095 = vrcp.f32 %v653_v37 }
 0x1dc   : > { %v565_v1 = vpop.xlane.xlu0 %564 }
 0x1dd   : > { %v571_v28 = vsel %vm491_vm6, %v565_v1, 0.0 }
 0x1de   : > { %572 = vadd.xlane.f32.xlu0 %v571_v28 }
 0x1e2   : > { %613 = vadd.xlane.f32.xlu0 %v612_v29 }
 0x1e3   : > { %v1092_v15 = vpop.eup %1091 }
 0x1e4   : > { %v1094_v17 = vpop.eup %1093  ;;  %v545_v18 = vmul.f32 0.6931472, %v1092_v15 }
 0x1e5   : > { %v633_v20 = vmul.f32 %v1094_v17, %v629_v16  ;;  %v1096_v38 = vpop.eup %1095 }
 0x1e6   : > { %v546_v19 = vadd.f32 %v545_v18, %v537_v58  ;;  %v655_v39 = vmul.f32 %v1096_v38, %v608_v35 }
 0x1e7   : > { %v634_v26 = vsub.f32 1.0, %v633_v20 }
 0x1e8   : > { %v547_v21 = vsub.f32 %v533_v54, %v546_v19  ;;  %vm657_vm10 = vcmp.gt.f32.partialorder %v655_v39, 0.5  ;;  %v672_v41 = vsub.f32 %v656_v40, %v655_v39 }
 0x1e9   : > { %v635_v30 = vmul.f32 %v932_v22, %v634_v26  ;;  %v933_v43 = vsel %vm657_vm10, 1.0, %v1294_v0 }
 0x1ea   : > { %v566_v24 = vmul.f32 %v930_v2, %v547_v21  ;;  %v660_v48 = vmul.f32 %v933_v43, %v932_v22  ;;  %v673_v49 = vmul.f32 %v672_v41, %v672_v41 }
 0x1eb   : > { %v636_v31 = vsel %vm491_vm6, %v635_v30, 0.0 }
 0x1ec   : > { %v567_v27 = vsel %vm534_vm7, %v566_v24, 0.0  ;;  %637 = vadd.xlane.f32.xlu0 %v636_v31  ;;  %v661_v53 = vsel %vm491_vm6, %v660_v48, 0.0  ;;  %v674_v54 = vmul.f32 %v673_v49, %v660_v48 }
 0x1ed   : > { %568 = vadd.xlane.f32.xlu1 %v567_v27 }
 0x1ee   : > { %v675_v57 = vsel %vm491_vm6, %v674_v54, 0.0 }
 0x26b   : > { %v573_v45 = vpop.xlane.xlu0 %572 }
 0x26c   : > { %v574_v46 = vrot.slane %v573_v45, 4 }
 0x26e   : > { %v575_v50 = vadd.f32 %v574_v46, %v573_v45 }
 0x26f   : > { %v614_v59 = vpop.xlane.xlu0 %613 }
 0x270   : > { %v576_v52 = vrot.slane %v575_v50, 2  ;;  %v615_v61 = vrot.slane %v614_v59, 4 }
 0x272   : > { %v577_v55 = vadd.f32 %v576_v52, %v575_v50  ;;  %v616_v63 = vadd.f32 %v615_v61, %v614_v59 }
 0x274   : > { %v578_v56 = vrot.slane %v577_v55, 1  ;;  %v617_v2 = vrot.slane %v616_v63, 2 }
 0x276   : > { %v579_v58 = vadd.f32 %v578_v56, %v577_v55  ;;  %v618_v9 = vadd.f32 %v617_v2, %v616_v63 }
 0x278   : > { %943 = vpush %v579_v58  ;;  %v619_v15 = vrot.slane %v618_v9, 1 }
 0x279   : > { %v638_v60 = vpop.xlane.xlu0 %637 }
 0x27a   : > { %v569_v42 = vpop.xlane.xlu1 %568  ;;  %v639_v62 = vrot.slane %v638_v60, 4  ;;  %v620_v23 = vadd.f32 %v619_v15, %v618_v9 }
 0x27b   : > { %v570_v44 = vsub.f32 0.0, %v569_v42 }
 0x27c   : > { %v640_v0 = vadd.f32 %v639_v62, %v638_v60 }
 0x27d   : > { %v583_v47 = vmul.f32 %v570_v44, %v565_v1 }
 0x27e   : > { %v641_v5 = vrot.slane %v640_v0, 2 }
 0x27f   : > { %v584_v51 = vsel %vm491_vm6, %v583_v47, 0.0 }
 0x280   : > { %585 = vadd.xlane.f32.xlu0 %v584_v51  ;;  %v642_v3 = vadd.f32 %v641_v5, %v640_v0 }
 0x282   : > { %v643_v19 = vrot.slane %v642_v3, 1 }
 0x284   : > { %662 = vadd.xlane.f32.xlu0 %v661_v53  ;;  %v644_v25 = vadd.f32 %v643_v19, %v642_v3 }
 0x288   : > { %676 = vadd.xlane.f32.xlu0 %v675_v57 }
 0x2a9   : > { %s944_s5 = spop %943 }
 0x2aa   : > { %v581_v30 = vstv %s944_s5 }
 0x2ab   : > { %v582_v31 = vmax.f32 %v581_v30, 1e-12 }
 0x2ad   : > { %1097 = vrcp.f32 %v582_v31 }
 0x2ae   : > { %1099 = vrcp.f32 %v625_v32 }
 0x2af   : > { %1101 = vrcp.f32 %v648_v33 }
 0x2b7   : > { %v1098_v34 = vpop.eup %1097 }
 0x2b8   : > { %v1100_v35 = vpop.eup %1099 }
 0x2b9   : > { %v1102_v36 = vpop.eup %1101 }
 0x30d   : > { %v586_v4 = vpop.xlane.xlu0 %585 }
 0x30e   : > { %v587_v6 = vrot.slane %v586_v4, 4 }
 0x310   : > { %v588_v7 = vadd.f32 %v587_v6, %v586_v4 }
 0x311   : > { %v663_v8 = vpop.xlane.xlu0 %662 }
 0x312   : > { %v589_v10 = vrot.slane %v588_v7, 2  ;;  %v664_v11 = vrot.slane %v663_v8, 4 }
 0x314   : > { %v665_v12 = vadd.f32 %v664_v11, %v663_v8  ;;  %v590_v13 = vadd.f32 %v589_v10, %v588_v7 }
 0x315   : > { %v677_v14 = vpop.xlane.xlu0 %676 }
 0x316   : > { %v666_v16 = vrot.slane %v665_v12, 2  ;;  %v678_v17 = vrot.slane %v677_v14, 4  ;;  %v591_v18 = vrot.slane %v590_v13, 1 }
 0x318   : > { %v679_v20 = vadd.f32 %v678_v17, %v677_v14  ;;  %v592_v21 = vadd.f32 %v591_v18, %v590_v13  ;;  %v667_v22 = vadd.f32 %v666_v16, %v665_v12 }
 0x31a   : > { %v680_v24 = vrot.slane %v679_v20, 2  ;;  %945 = vpush %v592_v21  ;;  %v668_v26 = vrot.slane %v667_v22, 1 }
 0x31b   : > { %947 = vpush %v620_v23 }
 0x31c   : > { %v681_v27 = vadd.f32 %v680_v24, %v679_v20  ;;  %949 = vpush %v644_v25  ;;  %v669_v1 = vadd.f32 %v668_v26, %v667_v22 }
 0x31e   : > { %951 = vpush %v669_v1  ;;  %v682_v28 = vrot.slane %v681_v27, 1 }
 0x320   : > { %v683_v29 = vadd.f32 %v682_v28, %v681_v27 }
 0x322   : > { %953 = vpush %v683_v29 }
 0x34b   : > { %s946_s30 = spop %945 }
 0x34c   : > { %v594_v37 = vstv %s946_s30  ;;  %s948_s15 = spop %947 }
 0x34d   : > { %v596_v38 = vmul.f32 %v1098_v34, %v594_v37  ;;  %v622_v39 = vstv %s948_s15  ;;  %s950_s26 = spop %949 }
 0x34e   : > { %v627_v40 = vmul.f32 %v1100_v35, %v622_v39  ;;  %v646_v41 = vstv %s950_s26 }
 0x34f   : > { %693 = vst.msk [vmem:[%s691_s19] sm:$0x1] %vm692_vm11, %v596_v38  ;;  %v650_v42 = vmul.f32 %v1102_v36, %v646_v41  ;;  %s952_s4 = spop %951 }
 0x350   : > { %695 = vst.msk [vmem:[%s691_s19] sm:$0x1] %vm694_vm12, %v627_v40  ;;  %v671_v43 = vstv %s952_s4 }
 0x351   : > { %697 = vst.msk [vmem:[%s691_s19] sm:$0x1] %vm696_vm13, %v650_v42  ;;  %v686_v44 = vmax.f32 %v671_v43, 1.0  ;;  %vm689_vm15 = vcmp.gt.f32.partialorder %v671_v43, 0.0 }
 0x353   : > { %1103 = vrcp.f32 %v686_v44  ;;  %s954_s7 = spop %953 }
 0x354   : > { %v685_v46 = vstv %s954_s7 }
 0x35d   : > { %v1104_v45 = vpop.eup %1103 }
 0x35e   : > { %v688_v47 = vmul.f32 %v1104_v45, %v685_v46 }
 0x360   : > { %v690_v48 = vsel %vm689_vm15, %v688_v47, 0.0 }
 0x361   : > { %699 = vst.msk [vmem:[%s691_s19] sm:$0x1] %vm698_vm14, %v690_v48 }
 0x362 PF: > { %s1770_s11 = sld [smem:[#allocation28_spill]]  ;;  %s939_s2 = sshll.u32 %s1271_s13, 5 }
 0x363   : > { %s1771_s29 = sld [smem:[#allocation36_spill]]  ;;  %s714_s24 = sshll.u32 %s388_s20, 4  ;;  %s1640_s24 = int_to_ptr.vmem [resolvable:$true] %s714_s24 }
 0x364   : > { %s1773_s3 = sand.u32 1, %s1243_s0   ;;  %s1147_s16 = scalar_lea.vmem %s1640_s24, 32 }
 0x365   : > { %s1644_s12 = scalar_lea.sflag [#allocation13], %s1773_s3  ;;  %p1148_p8 = scmp.ne.s32.totalorder %s1640_s24, %s1147_s16 }
 0x366   : > { %s1296_s13 = smov [#allocation14]  }
 0x367   : > { %s1151_s25 = sshll.u32 %s1296_s13, 4  ;;  %s1152_s25 = int_to_ptr.vmem [resolvable:$false] %s1151_s25 }
 0x368   : > { %p1774_p11 = scmp.ne.s32.totalorder %s1770_s11, 0  ;;  %s1153_s18 = scalar_lea.vmem %s1152_s25, 64 }
 0x369   : > { %s1772_s28 = smov %s1771_s29  ;;  %s1636_s23 = scalar_lea.hbm %s1771_s29, %s939_s2 }
 0x36a   : > { %p1149_p0 = pnand %p1148_p8, %p1774_p11  ;;  %p1154_p4 = scmp.lt.s32.totalorder %s1640_s24, %s1152_s25 }
 0x36b   : > { %p1155_p5 = scmp.lt.s32.totalorder %s1153_s18, %s1147_s16 }
 0x36c   : > { %p1150_p2 = pneg %p1149_p0 }
 0x36d   : > { %p1156_p10 = por %p1155_p5, %p1154_p4 }
 0x36f   : > { %p1157_p1 = pnand %p1156_p10, %p1150_p2 }
 0x371   : > { %1160 = shalt.err (!%p1157_p1)
}
 0x372   : > { %s1161_s20 = scalar_lea.hbm %s1636_s23, 32  ;;  %s1165_s22 = scalar_lea.hbm %s1772_s28, 64 }
 0x373   : > { %p1162_p13 = scmp.ne.s32.totalorder %s1636_s23, %s1161_s20  ;;  %p1166_p12 = scmp.lt.u32.totalorder %s1636_s23, %s1772_s28 }
 0x374   : > { %p1167_p9 = scmp.lt.u32.totalorder %s1165_s22, %s1161_s20  ;;  %p1169_p8 = scmp.lt.u32.totalorder %s1161_s20, %s1636_s23 }
 0x375   : > { %p1163_p3 = pnand %p1162_p13, %p1774_p11 }
 0x376   : > { %p1168_p6 = por %p1167_p9, %p1166_p12 }
 0x377   : > { %p1164_p7 = pneg %p1163_p3 }
 0x378   : > { %p1170_p0 = por %p1169_p8, %p1168_p6 }
 0x37a   : > { %p1171_p2 = pnand %p1170_p0, %p1164_p7 }
 0x37c   : > { %1174 = shalt.err (!%p1171_p2)
}
 0x37d   : > { %s1297_s14 = smov 16   ;;  %s1298_s30 = smov 1  }
 0x37e   : > { %957 = dma.vmem_to_hbm [thread:$0]  (%p1774_p11), %s1640_s24, 32, %s1636_s23, %s1644_s12, %s1297_s14, %s1297_s14, %s1298_s30  }
 0x37f PF: > { %s1775_s19 = sld [smem:[#allocation18_spill]]  ;;  %s1776_s15 = sld [smem:[#allocation29_spill]] }
 0x380   : > { %p968_p4 = scmp.ge.s32.totalorder %s1287_s17, 2 }
 0x385   : > { %s729_s26 = sand.u32 1, %s1775_s19   ;;  %p1777_p5 = scmp.ne.s32.totalorder %s1776_s15, 0 }
 0x386   : > { %s730_s4 = scalar_lea.sflag [#allocation13], %s729_s26 }
 0x387   : > { %p964_p10 = pnand %p968_p4, %p1777_p5 }
 0x389   : > { %1234 = dma.done.wait (!%p964_p10), %s730_s4, 32  }
 0x38a   : > { %1236 = vsyncadd (!%p964_p10), %s730_s4, 4294967264  ;;  %s29_s17 = sadd.s32 1, %s1287_s17   ;;  %s1779_s11 = sld [smem:[#allocation19_spill]] }
 0x38b   : > { %p1673_p1 = scmp.ge.s32.totalorder %s29_s17, 14   ;;  %s1780_s30 = sld [smem:[#allocation30_spill]] }
 0x38c   : > { %s1781_s8 = sld [smem:[#allocation20_spill]]  ;;  %s1782_s9 = sld [smem:[#allocation21_spill]] }
 0x38d   : > { %s1783_s10 = sld [smem:[#allocation31_spill]]  ;;  %s1784_s2 = sld [smem:[#allocation22_spill]] }
 0x38e   : > { %s1785_s12 = sld [smem:[#allocation23_spill]]  ;;  %s1786_s13 = sld [smem:[#allocation24_spill]] }
 0x38f   : > { %s1787_s14 = sld [smem:[#allocation25_spill]]  ;;  %s1788_s15 = sld [smem:[#allocation26_spill]] }
 0x390   : > { %s1789_s16 = sld [smem:[#allocation27_spill]]  ;;  %s1790_s29 = smov %s1243_s0 }
 0x391   : > { %s1791_s0 = smov %s1779_s11  ;;  %28 = sbr.rel (!%p1673_p1) target bundleno = 27 (0x1b), region = 124 }
 0x393   : > { %s1792_s11 = smov %s1784_s2 }
 0x398   :  { %735 = vsyncpa [#allocation12], 1 }
 0x399   :  { %737 = vsyncpa [#allocation12 + $0x1], 1 }
 0x39a   :  { %738 = vsyncpa [#allocation13], 1 }
 0x39b   :  { %740 = vsyncpa [#allocation13 + $0x1], 1 }

</bundles_post_ra>
